<compile_context>
chip_gen: v7x
topology: tpu7x:2x2x1
jax: 0.10.0
libtpu: 0.0.40
codegen_flags: <defaults>
</compile_context>

<pallas_src>
import functools
import math

import jax
import jax.numpy as jnp
from jax import lax
from jax.experimental import pallas as pl
from jax.experimental.pallas import tpu as pltpu

KS = 7          # kernel_size (7 -> padding 3, matching the PyTorch module)
PAD = KS // 2
_MIB = 1024 * 1024


# ----------------------------------------------------------------------------
# VMEM budgets (per-generation).
# ----------------------------------------------------------------------------
def _vmem_capacity_bytes():
    try:
        return int(pltpu.get_tpu_info().vmem_capacity_bytes)
    except Exception:
        return 64 * _MIB            # conservative default (v7x-sized VMEM)


def _budgets():
    """-> (reduce_tile_bytes, conv_slab_bytes, vmem_limit_bytes)."""
    cap = _vmem_capacity_bytes()
    if cap >= 100 * _MIB:           # v5e / v6e: 128 MiB physical VMEM
        return 14 * _MIB, 1 * _MIB, 64 * _MIB
    # v7x (64 MiB physical) or unknown: keep double-buffered tiles + conv
    # temporaries comfortably inside the part.
    return 6 * _MIB, 512 * 1024, 44 * _MIB


# ----------------------------------------------------------------------------
# Pass 1: channel mean / max over x in natural (N, C, H, W) layout.
# ----------------------------------------------------------------------------
def _reduce_kernel(x_ref, avg_ref, max_ref, *, inv_c):
    # x_ref  : VMEM (bc, H, W)  -- one channel tile of one image
    # avg_ref: VMEM (H, W) f32  -- running channel sum -> mean (resident output)
    # max_ref: VMEM (H, W) f32  -- running channel max (resident output)
    c_blk = pl.program_id(1)
    n_cblk = pl.num_programs(1)
    bc = x_ref.shape[0]

    @pl.when(c_blk == 0)
    def _():
        avg_ref[...] = jnp.zeros_like(avg_ref)
        max_ref[...] = jnp.full_like(max_ref, -jnp.inf)

    s = avg_ref[...]
    m = max_ref[...]
    if bc <= 16:
        # Fully unrolled, static first-axis indexing.
        for i in range(bc):
            xi = x_ref[i].astype(jnp.float32)
            s = s + xi
            m = jnp.maximum(m, xi)
    else:
        def body(i, carry):
            s_c, m_c = carry
            xi = x_ref[i].astype(jnp.float32)   # one (H, W) slice at a time
            return s_c + xi, jnp.maximum(m_c, xi)
        s, m = lax.fori_loop(0, bc, body, (s, m), unroll=math.gcd(bc, 8))
    avg_ref[...] = s
    max_ref[...] = m

    @pl.when(c_blk == n_cblk - 1)
    def _():
        avg_ref[...] = avg_ref[...] * inv_c


# ----------------------------------------------------------------------------
# Pass 2: 7x7 conv (2 -> 1 channels) + sigmoid on lane-packed slabs.
# ----------------------------------------------------------------------------
def _conv_kernel(w_ref, y_ref, o_ref, *, img_w):
    # w_ref: SMEM (2*KS*KS,) f32 -- conv weight flattened as [c, kh, kw]
    # y_ref: VMEM (2, H, BW) f32 -- lane-packed [avg, max], BW = bn * img_w
    # o_ref: VMEM (H, BW)        -- sigmoid(conv) output, lane-dense
    H, BW = o_ref.shape

    row = lax.broadcasted_iota(jnp.int32, (H, BW), 0)
    colw = lax.broadcasted_iota(jnp.int32, (H, BW), 1) % img_w
    # Boolean validity masks (computed once, small footprint).
    row_ok = {d: (row + d >= 0) & (row + d < H)
              for d in range(-PAD, PAD + 1) if d != 0}
    col_ok = {d: (colw + d >= 0) & (colw + d < img_w)
              for d in range(-PAD, PAD + 1) if d != 0}

    # Loop-interchanged taps: accumulate per-kw, roll lanes only 6 times.
    acc = [None] * KS
    for c in range(2):
        f = y_ref[c]                                   # (H, BW) f32
        for kh in range(KS):
            dh = kh - PAD
            if dh == 0:
                f_h = f
            else:
                f_h = jnp.where(row_ok[dh],
                                pltpu.roll(f, (-dh) % H, axis=0), 0.0)
            for kw in range(KS):
                wv = w_ref[c * KS * KS + kh * KS + kw]
                term = wv * f_h
                acc[kw] = term if acc[kw] is None else acc[kw] + term

    out = acc[PAD]                                     # dw == 0 tap column
    for kw in range(KS):
        dw = kw - PAD
        if dw == 0:
            continue
        out = out + jnp.where(col_ok[dw],
                              pltpu.roll(acc[kw], (-dw) % BW, axis=1), 0.0)

    o_ref[...] = jax.nn.sigmoid(out).astype(o_ref.dtype)


# ----------------------------------------------------------------------------
# Tiling heuristics.
# ----------------------------------------------------------------------------
def _pick_block_c(c, h, w, itemsize, tile_bytes):
    """Largest channel tile (divisor of c) with one input tile <= tile_bytes,
    dtype-aware (bf16/fp8 get proportionally larger tiles)."""
    max_c = max(1, tile_bytes // (h * w * itemsize))
    bc = int(min(c, max_c))
    while c % bc != 0:
        bc -= 1
    return bc


def _pick_block_n(n, w, h, slab_bytes):
    """Batch tile for the conv pass: lane-dense (bn*w % 128 == 0) if possible,
    bounded by the f32 slab budget, preferring >= 2 grid blocks (v7x has two
    TensorCores).  Falls back to the full batch (always a legal BlockSpec)."""
    divisors = [bn for bn in range(1, n + 1) if n % bn == 0]
    aligned = [bn for bn in divisors if (bn * w) % 128 == 0]
    if not aligned:
        return n                      # full-extent last dim; output is tiny
    max_lanes = max(w, slab_bytes // (4 * h))
    fitting = [bn for bn in aligned if bn * w <= max_lanes] or [min(aligned)]
    multi = [bn for bn in fitting if n // bn >= 2]
    return max(multi) if multi else max(fitting)


# ----------------------------------------------------------------------------
# Wrapper.
# ----------------------------------------------------------------------------
def spatial_attention(x, weight):
    """x: (N, C, H, W); weight: (1, 2, KS, KS) -> (N, 1, H, W)."""
    N, C, H, W = x.shape
    w_flat = weight.reshape(-1).astype(jnp.float32)          # (2*KS*KS,)

    tile_bytes, slab_bytes, vmem_limit = _budgets()

    # ---- Pass 1: channel mean / max (x read once, natural layout) ----
    bc = _pick_block_c(C, H, W, jnp.dtype(x.dtype).itemsize, tile_bytes)
    avg, mx = pl.pallas_call(
        functools.partial(_reduce_kernel, inv_c=1.0 / C),
        out_shape=(jax.ShapeDtypeStruct((N, H, W), jnp.float32),
                   jax.ShapeDtypeStruct((N, H, W), jnp.float32)),
        grid_spec=pltpu.PrefetchScalarGridSpec(
            num_scalar_prefetch=0,
            grid=(N, C // bc),
            in_specs=[pl.BlockSpec((None, bc, H, W),
                                   lambda n, c: (n, c, 0, 0))],
            out_specs=[pl.BlockSpec((None, H, W), lambda n, c: (n, 0, 0)),
                       pl.BlockSpec((None, H, W), lambda n, c: (n, 0, 0))]),
        compiler_params=pltpu.CompilerParams(
            dimension_semantics=("parallel", "arbitrary"),
            vmem_limit_bytes=vmem_limit),
    )(x)

    # ---- Lane-pack only the small 2-channel intermediate: (2, H, N*W) ----
    y = jnp.stack([avg, mx], axis=0)                         # (2, N, H, W)
    y_packed = jnp.transpose(y, (0, 2, 1, 3)).reshape(2, H, N * W)

    # ---- Pass 2: 7x7 conv + sigmoid on lane-dense slabs ----
    bn = _pick_block_n(N, W, H, slab_bytes)
    bw = bn * W
    o_packed = pl.pallas_call(
        functools.partial(_conv_kernel, img_w=W),
        out_shape=jax.ShapeDtypeStruct((H, N * W), x.dtype),
        grid_spec=pltpu.PrefetchScalarGridSpec(
            num_scalar_prefetch=0,
            grid=(N // bn,),
            in_specs=[
                pl.BlockSpec(memory_space=pltpu.MemorySpace.SMEM),  # weights
                pl.BlockSpec((2, H, bw), lambda n: (0, 0, n)),
            ],
            out_specs=pl.BlockSpec((H, bw), lambda n: (0, n))),
        compiler_params=pltpu.CompilerParams(
            dimension_semantics=("parallel",),
            vmem_limit_bytes=vmem_limit),
    )(w_flat, y_packed)

    # Unpack (H, N*W) -> (N, 1, H, W).
    return jnp.transpose(o_packed.reshape(H, N, W), (1, 0, 2))[:, None]


# ----------------------------------------------------------------------------
# Pure-JAX reference.
# ----------------------------------------------------------------------------
def spatial_attention_ref(x, weight):
    avg = jnp.mean(x, axis=1, keepdims=True)
    mx = jnp.max(x, axis=1, keepdims=True)
    y = jnp.concatenate([avg, mx], axis=1)
    y = lax.conv_general_dilated(
        y, weight, window_strides=(1, 1),
        padding=[(PAD, PAD), (PAD, PAD)],
        dimension_numbers=("NCHW", "OIHW", "NCHW"))
    return jax.nn.sigmoid(y)


if __name__ == "__main__":
    key = jax.random.PRNGKey(0)
    kx, kw = jax.random.split(key)

    N, C, H, W = 2, 4, 16, 16
    x = jax.random.normal(kx, (N, C, H, W), dtype=jnp.float32)
    # Deterministic synthetic weight: Conv2d(2, 1, 7, bias=False) -> (1, 2, 7, 7)
    weight = jax.random.normal(kw, (1, 2, KS, KS), dtype=jnp.float32) * 0.1

    out = jax.jit(spatial_attention)(x, weight)
    out = jax.block_until_ready(out)

    ref = spatial_attention_ref(x, weight)
    assert out.shape == (N, 1, H, W)
    assert jnp.allclose(out, ref, atol=1e-4, rtol=1e-4), float(
        jnp.max(jnp.abs(out - ref)))

    print("KERNEL_OK")
</pallas_src>

<mosaic_0001>
module attributes {stable_mosaic.version = 11 : i64} {
  func.func @_reduce_kernel(%arg0: i32, %arg1: i32, %arg2: memref<1x4x16x16xf32, #tpu.memory_space<vmem>>, %arg3: memref<1x16x16xf32, #tpu.memory_space<vmem>>, %arg4: memref<1x16x16xf32, #tpu.memory_space<vmem>>) attributes {dimension_semantics = [#tpu.dimension_semantics<parallel>, #tpu.dimension_semantics<arbitrary>], iteration_bounds = array<i64: 2, 1>, scalar_prefetch = 0 : i64, scratch_operands = 0 : i64, tpu.core_type = #tpu.core_type<tc>, window_params = [{transform_indices = @transform_0, window_bounds = array<i64: 1, 4, 16, 16>}, {transform_indices = @transform_1, window_bounds = array<i64: 1, 16, 16>}, {transform_indices = @transform_2, window_bounds = array<i64: 1, 16, 16>}]} {
    %c0_i32 = arith.constant 0 : i32
    %0 = arith.cmpi eq, %arg1, %c0_i32 : i32
    %1 = arith.extui %0 : i1 to i32
    %c0_i32_0 = arith.constant 0 : i32
    %2 = arith.cmpi ne, %1, %c0_i32_0 : i32
    scf.if %2 {
      %cst = arith.constant 0.000000e+00 : f32
      %32 = vector.broadcast %cst : f32 to vector<16x16xf32>
      %c0_27 = arith.constant 0 : index
      %c0_28 = arith.constant 0 : index
      %c0_29 = arith.constant 0 : index
      %33 = vector.load %arg3[%c0_27, %c0_28, %c0_29] : memref<1x16x16xf32, #tpu.memory_space<vmem>>, vector<1x16x16xf32>
      %34 = vector.shape_cast %33 : vector<1x16x16xf32> to vector<16x16xf32>
      %35 = vector.shape_cast %32 : vector<16x16xf32> to vector<1x16x16xf32>
      tpu.vector_store %arg3[%c0_27, %c0_28, %c0_29], %35 {strides = array<i32>} : memref<1x16x16xf32, #tpu.memory_space<vmem>>, vector<1x16x16xf32>,
      %cst_30 = arith.constant 0xFF800000 : f32
      %36 = vector.broadcast %cst_30 : f32 to vector<16x16xf32>
      %c0_31 = arith.constant 0 : index
      %c0_32 = arith.constant 0 : index
      %c0_33 = arith.constant 0 : index
      %37 = vector.load %arg4[%c0_31, %c0_32, %c0_33] : memref<1x16x16xf32, #tpu.memory_space<vmem>>, vector<1x16x16xf32>
      %38 = vector.shape_cast %37 : vector<1x16x16xf32> to vector<16x16xf32>
      %39 = vector.shape_cast %36 : vector<16x16xf32> to vector<1x16x16xf32>
      tpu.vector_store %arg4[%c0_31, %c0_32, %c0_33], %39 {strides = array<i32>} : memref<1x16x16xf32, #tpu.memory_space<vmem>>, vector<1x16x16xf32>,
    } else {
    }
    %c0 = arith.constant 0 : index
    %c0_1 = arith.constant 0 : index
    %c0_2 = arith.constant 0 : index
    %3 = vector.load %arg3[%c0, %c0_1, %c0_2] : memref<1x16x16xf32, #tpu.memory_space<vmem>>, vector<1x16x16xf32>
    %4 = vector.shape_cast %3 : vector<1x16x16xf32> to vector<16x16xf32>
    %c0_3 = arith.constant 0 : index
    %c0_4 = arith.constant 0 : index
    %c0_5 = arith.constant 0 : index
    %5 = vector.load %arg4[%c0_3, %c0_4, %c0_5] : memref<1x16x16xf32, #tpu.memory_space<vmem>>, vector<1x16x16xf32>
    %6 = vector.shape_cast %5 : vector<1x16x16xf32> to vector<16x16xf32>
    %c0_6 = arith.constant 0 : index
    %c0_7 = arith.constant 0 : index
    %c0_8 = arith.constant 0 : index
    %c0_9 = arith.constant 0 : index
    %7 = vector.load %arg2[%c0_6, %c0_7, %c0_8, %c0_9] : memref<1x4x16x16xf32, #tpu.memory_space<vmem>>, vector<1x1x16x16xf32>
    %8 = vector.shape_cast %7 : vector<1x1x16x16xf32> to vector<16x16xf32>
    %9 = arith.addf %4, %8 : vector<16x16xf32>
    %10 = arith.maximumf %6, %8 : vector<16x16xf32>
    %c0_10 = arith.constant 0 : index
    %c1 = arith.constant 1 : index
    %c0_11 = arith.constant 0 : index
    %c0_12 = arith.constant 0 : index
    %11 = vector.load %arg2[%c0_10, %c1, %c0_11, %c0_12] : memref<1x4x16x16xf32, #tpu.memory_space<vmem>>, vector<1x1x16x16xf32>
    %12 = vector.shape_cast %11 : vector<1x1x16x16xf32> to vector<16x16xf32>
    %13 = arith.addf %9, %12 : vector<16x16xf32>
    %14 = arith.maximumf %10, %12 : vector<16x16xf32>
    %c0_13 = arith.constant 0 : index
    %c2 = arith.constant 2 : index
    %c0_14 = arith.constant 0 : index
    %c0_15 = arith.constant 0 : index
    %15 = vector.load %arg2[%c0_13, %c2, %c0_14, %c0_15] : memref<1x4x16x16xf32, #tpu.memory_space<vmem>>, vector<1x1x16x16xf32>
    %16 = vector.shape_cast %15 : vector<1x1x16x16xf32> to vector<16x16xf32>
    %17 = arith.addf %13, %16 : vector<16x16xf32>
    %18 = arith.maximumf %14, %16 : vector<16x16xf32>
    %c0_16 = arith.constant 0 : index
    %c3 = arith.constant 3 : index
    %c0_17 = arith.constant 0 : index
    %c0_18 = arith.constant 0 : index
    %19 = vector.load %arg2[%c0_16, %c3, %c0_17, %c0_18] : memref<1x4x16x16xf32, #tpu.memory_space<vmem>>, vector<1x1x16x16xf32>
    %20 = vector.shape_cast %19 : vector<1x1x16x16xf32> to vector<16x16xf32>
    %21 = arith.addf %17, %20 : vector<16x16xf32>
    %22 = arith.maximumf %18, %20 : vector<16x16xf32>
    %c0_19 = arith.constant 0 : index
    %c0_20 = arith.constant 0 : index
    %c0_21 = arith.constant 0 : index
    %23 = vector.load %arg3[%c0_19, %c0_20, %c0_21] : memref<1x16x16xf32, #tpu.memory_space<vmem>>, vector<1x16x16xf32>
    %24 = vector.shape_cast %23 : vector<1x16x16xf32> to vector<16x16xf32>
    %25 = vector.shape_cast %21 : vector<16x16xf32> to vector<1x16x16xf32>
    tpu.vector_store %arg3[%c0_19, %c0_20, %c0_21], %25 {strides = array<i32>} : memref<1x16x16xf32, #tpu.memory_space<vmem>>, vector<1x16x16xf32>,
    %c0_22 = arith.constant 0 : index
    %c0_23 = arith.constant 0 : index
    %c0_24 = arith.constant 0 : index
    %26 = vector.load %arg4[%c0_22, %c0_23, %c0_24] : memref<1x16x16xf32, #tpu.memory_space<vmem>>, vector<1x16x16xf32>
    %27 = vector.shape_cast %26 : vector<1x16x16xf32> to vector<16x16xf32>
    %28 = vector.shape_cast %22 : vector<16x16xf32> to vector<1x16x16xf32>
    tpu.vector_store %arg4[%c0_22, %c0_23, %c0_24], %28 {strides = array<i32>} : memref<1x16x16xf32, #tpu.memory_space<vmem>>, vector<1x16x16xf32>,
    %c0_i32_25 = arith.constant 0 : i32
    %29 = arith.cmpi eq, %arg1, %c0_i32_25 : i32
    %30 = arith.extui %29 : i1 to i32
    %c0_i32_26 = arith.constant 0 : i32
    %31 = arith.cmpi ne, %30, %c0_i32_26 : i32
    scf.if %31 {
      %c0_27 = arith.constant 0 : index
      %c0_28 = arith.constant 0 : index
      %c0_29 = arith.constant 0 : index
      %32 = vector.load %arg3[%c0_27, %c0_28, %c0_29] : memref<1x16x16xf32, #tpu.memory_space<vmem>>, vector<1x16x16xf32>
      %33 = vector.shape_cast %32 : vector<1x16x16xf32> to vector<16x16xf32>
      %cst = arith.constant 2.500000e-01 : f32
      %34 = vector.broadcast %cst : f32 to vector<16x16xf32>
      %35 = arith.mulf %33, %34 : vector<16x16xf32>
      %c0_30 = arith.constant 0 : index
      %c0_31 = arith.constant 0 : index
      %c0_32 = arith.constant 0 : index
      %36 = vector.load %arg3[%c0_30, %c0_31, %c0_32] : memref<1x16x16xf32, #tpu.memory_space<vmem>>, vector<1x16x16xf32>
      %37 = vector.shape_cast %36 : vector<1x16x16xf32> to vector<16x16xf32>
      %38 = vector.shape_cast %35 : vector<16x16xf32> to vector<1x16x16xf32>
      tpu.vector_store %arg3[%c0_30, %c0_31, %c0_32], %38 {strides = array<i32>} : memref<1x16x16xf32, #tpu.memory_space<vmem>>, vector<1x16x16xf32>,
    } else {
    }
    return
  }
  func.func @transform_0(%arg0: i32, %arg1: i32) -> (i32, i32, i32, i32) {
    %c0_i32 = arith.constant 0 : i32
    %c0_i32_0 = arith.constant 0 : i32
    %c0_i32_1 = arith.constant 0 : i32
    return %arg0, %arg1, %c0_i32, %c0_i32_0 : i32, i32, i32, i32
  }
  func.func @transform_1(%arg0: i32, %arg1: i32) -> (i32, i32, i32) {
    %c0_i32 = arith.constant 0 : i32
    %c0_i32_0 = arith.constant 0 : i32
    %c0_i32_1 = arith.constant 0 : i32
    return %arg0, %c0_i32, %c0_i32_0 : i32, i32, i32
  }
  func.func @transform_2(%arg0: i32, %arg1: i32) -> (i32, i32, i32) {
    %c0_i32 = arith.constant 0 : i32
    %c0_i32_0 = arith.constant 0 : i32
    %c0_i32_1 = arith.constant 0 : i32
    return %arg0, %c0_i32, %c0_i32_0 : i32, i32, i32
  }
}

module attributes {stable_mosaic.version = 11 : i64} {
  func.func @_conv_kernel(%arg0: i32, %arg1: memref<98xf32, #tpu.memory_space<smem>>, %arg2: memref<2x16x32xf32, #tpu.memory_space<vmem>>, %arg3: memref<16x32xf32, #tpu.memory_space<vmem>>) attributes {dimension_semantics = [#tpu.dimension_semantics<parallel>], iteration_bounds = array<i64: 1>, scalar_prefetch = 0 : i64, scratch_operands = 0 : i64, tpu.core_type = #tpu.core_type<tc>, window_params = [{transform_indices = @transform_0, window_bounds = array<i64: 98>}, {transform_indices = @transform_1, window_bounds = array<i64: 2, 16, 32>}, {transform_indices = @transform_2, window_bounds = array<i64: 16, 32>}]} {
    %0 = tpu.iota {dimensions = array<i32: 0>} : vector<16x32xi32>
    %1 = tpu.iota {dimensions = array<i32: 1>} : vector<16x32xi32>
    %c16_i32 = arith.constant 16 : i32
    %c0_i32 = arith.constant 0 : i32
    %2 = arith.cmpi eq, %c16_i32, %c0_i32 : i32
    %c1_i32 = arith.constant 1 : i32
    %3 = arith.select %2, %c1_i32, %c16_i32 : i32
    %4 = vector.broadcast %3 : i32 to vector<16x32xi32>
    %5 = arith.remsi %1, %4 : vector<16x32xi32>
    %c0_i32_0 = arith.constant 0 : i32
    %6 = vector.broadcast %c0_i32_0 : i32 to vector<16x32xi32>
    %7 = arith.cmpi ne, %5, %6 : vector<16x32xi32>
    %c0_i32_1 = arith.constant 0 : i32
    %8 = vector.broadcast %c0_i32_1 : i32 to vector<16x32xi32>
    %9 = arith.cmpi slt, %5, %8 : vector<16x32xi32>
    %c0_i32_2 = arith.constant 0 : i32
    %10 = arith.cmpi slt, %3, %c0_i32_2 : i32
    %11 = vector.broadcast %10 : i1 to vector<16x32xi1>
    %12 = vector.broadcast %11 : vector<16x32xi1> to vector<16x32xi1>
    %13 = arith.xori %9, %12 : vector<16x32xi1>
    %14 = arith.andi %13, %7 : vector<16x32xi1>
    %15 = vector.broadcast %3 : i32 to vector<16x32xi32>
    %16 = arith.addi %5, %15 : vector<16x32xi32>
    %17 = arith.select %14, %16, %5 : vector<16x32xi1>, vector<16x32xi32>
    %c-3_i32 = arith.constant -3 : i32
    %18 = vector.broadcast %c-3_i32 : i32 to vector<16x32xi32>
    %19 = arith.addi %0, %18 : vector<16x32xi32>
    %c0_i32_3 = arith.constant 0 : i32
    %20 = vector.broadcast %c0_i32_3 : i32 to vector<16x32xi32>
    %21 = arith.cmpi sge, %19, %20 : vector<16x32xi32>
    %c-3_i32_4 = arith.constant -3 : i32
    %22 = vector.broadcast %c-3_i32_4 : i32 to vector<16x32xi32>
    %23 = arith.addi %0, %22 : vector<16x32xi32>
    %c16_i32_5 = arith.constant 16 : i32
    %24 = vector.broadcast %c16_i32_5 : i32 to vector<16x32xi32>
    %25 = arith.cmpi slt, %23, %24 : vector<16x32xi32>
    %26 = arith.andi %21, %25 : vector<16x32xi1>
    %c-2_i32 = arith.constant -2 : i32
    %27 = vector.broadcast %c-2_i32 : i32 to vector<16x32xi32>
    %28 = arith.addi %0, %27 : vector<16x32xi32>
    %c0_i32_6 = arith.constant 0 : i32
    %29 = vector.broadcast %c0_i32_6 : i32 to vector<16x32xi32>
    %30 = arith.cmpi sge, %28, %29 : vector<16x32xi32>
    %c-2_i32_7 = arith.constant -2 : i32
    %31 = vector.broadcast %c-2_i32_7 : i32 to vector<16x32xi32>
    %32 = arith.addi %0, %31 : vector<16x32xi32>
    %c16_i32_8 = arith.constant 16 : i32
    %33 = vector.broadcast %c16_i32_8 : i32 to vector<16x32xi32>
    %34 = arith.cmpi slt, %32, %33 : vector<16x32xi32>
    %35 = arith.andi %30, %34 : vector<16x32xi1>
    %c-1_i32 = arith.constant -1 : i32
    %36 = vector.broadcast %c-1_i32 : i32 to vector<16x32xi32>
    %37 = arith.addi %0, %36 : vector<16x32xi32>
    %c0_i32_9 = arith.constant 0 : i32
    %38 = vector.broadcast %c0_i32_9 : i32 to vector<16x32xi32>
    %39 = arith.cmpi sge, %37, %38 : vector<16x32xi32>
    %c-1_i32_10 = arith.constant -1 : i32
    %40 = vector.broadcast %c-1_i32_10 : i32 to vector<16x32xi32>
    %41 = arith.addi %0, %40 : vector<16x32xi32>
    %c16_i32_11 = arith.constant 16 : i32
    %42 = vector.broadcast %c16_i32_11 : i32 to vector<16x32xi32>
    %43 = arith.cmpi slt, %41, %42 : vector<16x32xi32>
    %44 = arith.andi %39, %43 : vector<16x32xi1>
    %c1_i32_12 = arith.constant 1 : i32
    %45 = vector.broadcast %c1_i32_12 : i32 to vector<16x32xi32>
    %46 = arith.addi %0, %45 : vector<16x32xi32>
    %c0_i32_13 = arith.constant 0 : i32
    %47 = vector.broadcast %c0_i32_13 : i32 to vector<16x32xi32>
    %48 = arith.cmpi sge, %46, %47 : vector<16x32xi32>
    %c1_i32_14 = arith.constant 1 : i32
    %49 = vector.broadcast %c1_i32_14 : i32 to vector<16x32xi32>
    %50 = arith.addi %0, %49 : vector<16x32xi32>
    %c16_i32_15 = arith.constant 16 : i32
    %51 = vector.broadcast %c16_i32_15 : i32 to vector<16x32xi32>
    %52 = arith.cmpi slt, %50, %51 : vector<16x32xi32>
    %53 = arith.andi %48, %52 : vector<16x32xi1>
    %c2_i32 = arith.constant 2 : i32
    %54 = vector.broadcast %c2_i32 : i32 to vector<16x32xi32>
    %55 = arith.addi %0, %54 : vector<16x32xi32>
    %c0_i32_16 = arith.constant 0 : i32
    %56 = vector.broadcast %c0_i32_16 : i32 to vector<16x32xi32>
    %57 = arith.cmpi sge, %55, %56 : vector<16x32xi32>
    %c2_i32_17 = arith.constant 2 : i32
    %58 = vector.broadcast %c2_i32_17 : i32 to vector<16x32xi32>
    %59 = arith.addi %0, %58 : vector<16x32xi32>
    %c16_i32_18 = arith.constant 16 : i32
    %60 = vector.broadcast %c16_i32_18 : i32 to vector<16x32xi32>
    %61 = arith.cmpi slt, %59, %60 : vector<16x32xi32>
    %62 = arith.andi %57, %61 : vector<16x32xi1>
    %c3_i32 = arith.constant 3 : i32
    %63 = vector.broadcast %c3_i32 : i32 to vector<16x32xi32>
    %64 = arith.addi %0, %63 : vector<16x32xi32>
    %c0_i32_19 = arith.constant 0 : i32
    %65 = vector.broadcast %c0_i32_19 : i32 to vector<16x32xi32>
    %66 = arith.cmpi sge, %64, %65 : vector<16x32xi32>
    %c3_i32_20 = arith.constant 3 : i32
    %67 = vector.broadcast %c3_i32_20 : i32 to vector<16x32xi32>
    %68 = arith.addi %0, %67 : vector<16x32xi32>
    %c16_i32_21 = arith.constant 16 : i32
    %69 = vector.broadcast %c16_i32_21 : i32 to vector<16x32xi32>
    %70 = arith.cmpi slt, %68, %69 : vector<16x32xi32>
    %71 = arith.andi %66, %70 : vector<16x32xi1>
    %c-3_i32_22 = arith.constant -3 : i32
    %72 = vector.broadcast %c-3_i32_22 : i32 to vector<16x32xi32>
    %73 = arith.addi %17, %72 : vector<16x32xi32>
    %c0_i32_23 = arith.constant 0 : i32
    %74 = vector.broadcast %c0_i32_23 : i32 to vector<16x32xi32>
    %75 = arith.cmpi sge, %73, %74 : vector<16x32xi32>
    %c-3_i32_24 = arith.constant -3 : i32
    %76 = vector.broadcast %c-3_i32_24 : i32 to vector<16x32xi32>
    %77 = arith.addi %17, %76 : vector<16x32xi32>
    %c16_i32_25 = arith.constant 16 : i32
    %78 = vector.broadcast %c16_i32_25 : i32 to vector<16x32xi32>
    %79 = arith.cmpi slt, %77, %78 : vector<16x32xi32>
    %80 = arith.andi %75, %79 : vector<16x32xi1>
    %c-2_i32_26 = arith.constant -2 : i32
    %81 = vector.broadcast %c-2_i32_26 : i32 to vector<16x32xi32>
    %82 = arith.addi %17, %81 : vector<16x32xi32>
    %c0_i32_27 = arith.constant 0 : i32
    %83 = vector.broadcast %c0_i32_27 : i32 to vector<16x32xi32>
    %84 = arith.cmpi sge, %82, %83 : vector<16x32xi32>
    %c-2_i32_28 = arith.constant -2 : i32
    %85 = vector.broadcast %c-2_i32_28 : i32 to vector<16x32xi32>
    %86 = arith.addi %17, %85 : vector<16x32xi32>
    %c16_i32_29 = arith.constant 16 : i32
    %87 = vector.broadcast %c16_i32_29 : i32 to vector<16x32xi32>
    %88 = arith.cmpi slt, %86, %87 : vector<16x32xi32>
    %89 = arith.andi %84, %88 : vector<16x32xi1>
    %c-1_i32_30 = arith.constant -1 : i32
    %90 = vector.broadcast %c-1_i32_30 : i32 to vector<16x32xi32>
    %91 = arith.addi %17, %90 : vector<16x32xi32>
    %c0_i32_31 = arith.constant 0 : i32
    %92 = vector.broadcast %c0_i32_31 : i32 to vector<16x32xi32>
    %93 = arith.cmpi sge, %91, %92 : vector<16x32xi32>
    %c-1_i32_32 = arith.constant -1 : i32
    %94 = vector.broadcast %c-1_i32_32 : i32 to vector<16x32xi32>
    %95 = arith.addi %17, %94 : vector<16x32xi32>
    %c16_i32_33 = arith.constant 16 : i32
    %96 = vector.broadcast %c16_i32_33 : i32 to vector<16x32xi32>
    %97 = arith.cmpi slt, %95, %96 : vector<16x32xi32>
    %98 = arith.andi %93, %97 : vector<16x32xi1>
    %c1_i32_34 = arith.constant 1 : i32
    %99 = vector.broadcast %c1_i32_34 : i32 to vector<16x32xi32>
    %100 = arith.addi %17, %99 : vector<16x32xi32>
    %c0_i32_35 = arith.constant 0 : i32
    %101 = vector.broadcast %c0_i32_35 : i32 to vector<16x32xi32>
    %102 = arith.cmpi sge, %100, %101 : vector<16x32xi32>
    %c1_i32_36 = arith.constant 1 : i32
    %103 = vector.broadcast %c1_i32_36 : i32 to vector<16x32xi32>
    %104 = arith.addi %17, %103 : vector<16x32xi32>
    %c16_i32_37 = arith.constant 16 : i32
    %105 = vector.broadcast %c16_i32_37 : i32 to vector<16x32xi32>
    %106 = arith.cmpi slt, %104, %105 : vector<16x32xi32>
    %107 = arith.andi %102, %106 : vector<16x32xi1>
    %c2_i32_38 = arith.constant 2 : i32
    %108 = vector.broadcast %c2_i32_38 : i32 to vector<16x32xi32>
    %109 = arith.addi %17, %108 : vector<16x32xi32>
    %c0_i32_39 = arith.constant 0 : i32
    %110 = vector.broadcast %c0_i32_39 : i32 to vector<16x32xi32>
    %111 = arith.cmpi sge, %109, %110 : vector<16x32xi32>
    %c2_i32_40 = arith.constant 2 : i32
    %112 = vector.broadcast %c2_i32_40 : i32 to vector<16x32xi32>
    %113 = arith.addi %17, %112 : vector<16x32xi32>
    %c16_i32_41 = arith.constant 16 : i32
    %114 = vector.broadcast %c16_i32_41 : i32 to vector<16x32xi32>
    %115 = arith.cmpi slt, %113, %114 : vector<16x32xi32>
    %116 = arith.andi %111, %115 : vector<16x32xi1>
    %c3_i32_42 = arith.constant 3 : i32
    %117 = vector.broadcast %c3_i32_42 : i32 to vector<16x32xi32>
    %118 = arith.addi %17, %117 : vector<16x32xi32>
    %c0_i32_43 = arith.constant 0 : i32
    %119 = vector.broadcast %c0_i32_43 : i32 to vector<16x32xi32>
    %120 = arith.cmpi sge, %118, %119 : vector<16x32xi32>
    %c3_i32_44 = arith.constant 3 : i32
    %121 = vector.broadcast %c3_i32_44 : i32 to vector<16x32xi32>
    %122 = arith.addi %17, %121 : vector<16x32xi32>
    %c16_i32_45 = arith.constant 16 : i32
    %123 = vector.broadcast %c16_i32_45 : i32 to vector<16x32xi32>
    %124 = arith.cmpi slt, %122, %123 : vector<16x32xi32>
    %125 = arith.andi %120, %124 : vector<16x32xi1>
    %c0 = arith.constant 0 : index
    %c0_46 = arith.constant 0 : index
    %c0_47 = arith.constant 0 : index
    %126 = vector.load %arg2[%c0, %c0_46, %c0_47] : memref<2x16x32xf32, #tpu.memory_space<vmem>>, vector<1x16x32xf32>
    %127 = vector.shape_cast %126 : vector<1x16x32xf32> to vector<16x32xf32>
    %c3_i32_48 = arith.constant 3 : i32
    %128 = tpu.dynamic_rotate %127 by %c3_i32_48 dim 0 : vector<16x32xf32>, i32 -> vector<16x32xf32>
    %cst = arith.constant 0.000000e+00 : f32
    %129 = vector.broadcast %cst : f32 to vector<16x32xf32>
    %130 = arith.select %26, %128, %129 : vector<16x32xi1>, vector<16x32xf32>
    %c0_49 = arith.constant 0 : index
    %131 = memref.load %arg1[%c0_49] : memref<98xf32, #tpu.memory_space<smem>>
    %132 = vector.broadcast %131 : f32 to vector<16x32xf32>
    %133 = arith.mulf %132, %130 : vector<16x32xf32>
    %c1 = arith.constant 1 : index
    %134 = memref.load %arg1[%c1] : memref<98xf32, #tpu.memory_space<smem>>
    %135 = vector.broadcast %134 : f32 to vector<16x32xf32>
    %136 = arith.mulf %135, %130 : vector<16x32xf32>
    %c2 = arith.constant 2 : index
    %137 = memref.load %arg1[%c2] : memref<98xf32, #tpu.memory_space<smem>>
    %138 = vector.broadcast %137 : f32 to vector<16x32xf32>
    %139 = arith.mulf %138, %130 : vector<16x32xf32>
    %c3 = arith.constant 3 : index
    %140 = memref.load %arg1[%c3] : memref<98xf32, #tpu.memory_space<smem>>
    %141 = vector.broadcast %140 : f32 to vector<16x32xf32>
    %142 = arith.mulf %141, %130 : vector<16x32xf32>
    %c4 = arith.constant 4 : index
    %143 = memref.load %arg1[%c4] : memref<98xf32, #tpu.memory_space<smem>>
    %144 = vector.broadcast %143 : f32 to vector<16x32xf32>
    %145 = arith.mulf %144, %130 : vector<16x32xf32>
    %c5 = arith.constant 5 : index
    %146 = memref.load %arg1[%c5] : memref<98xf32, #tpu.memory_space<smem>>
    %147 = vector.broadcast %146 : f32 to vector<16x32xf32>
    %148 = arith.mulf %147, %130 : vector<16x32xf32>
    %c6 = arith.constant 6 : index
    %149 = memref.load %arg1[%c6] : memref<98xf32, #tpu.memory_space<smem>>
    %150 = vector.broadcast %149 : f32 to vector<16x32xf32>
    %151 = arith.mulf %150, %130 : vector<16x32xf32>
    %c2_i32_50 = arith.constant 2 : i32
    %152 = tpu.dynamic_rotate %127 by %c2_i32_50 dim 0 : vector<16x32xf32>, i32 -> vector<16x32xf32>
    %cst_51 = arith.constant 0.000000e+00 : f32
    %153 = vector.broadcast %cst_51 : f32 to vector<16x32xf32>
    %154 = arith.select %35, %152, %153 : vector<16x32xi1>, vector<16x32xf32>
    %c7 = arith.constant 7 : index
    %155 = memref.load %arg1[%c7] : memref<98xf32, #tpu.memory_space<smem>>
    %156 = vector.broadcast %155 : f32 to vector<16x32xf32>
    %157 = arith.mulf %156, %154 : vector<16x32xf32>
    %158 = arith.addf %133, %157 : vector<16x32xf32>
    %c8 = arith.constant 8 : index
    %159 = memref.load %arg1[%c8] : memref<98xf32, #tpu.memory_space<smem>>
    %160 = vector.broadcast %159 : f32 to vector<16x32xf32>
    %161 = arith.mulf %160, %154 : vector<16x32xf32>
    %162 = arith.addf %136, %161 : vector<16x32xf32>
    %c9 = arith.constant 9 : index
    %163 = memref.load %arg1[%c9] : memref<98xf32, #tpu.memory_space<smem>>
    %164 = vector.broadcast %163 : f32 to vector<16x32xf32>
    %165 = arith.mulf %164, %154 : vector<16x32xf32>
    %166 = arith.addf %139, %165 : vector<16x32xf32>
    %c10 = arith.constant 10 : index
    %167 = memref.load %arg1[%c10] : memref<98xf32, #tpu.memory_space<smem>>
    %168 = vector.broadcast %167 : f32 to vector<16x32xf32>
    %169 = arith.mulf %168, %154 : vector<16x32xf32>
    %170 = arith.addf %142, %169 : vector<16x32xf32>
    %c11 = arith.constant 11 : index
    %171 = memref.load %arg1[%c11] : memref<98xf32, #tpu.memory_space<smem>>
    %172 = vector.broadcast %171 : f32 to vector<16x32xf32>
    %173 = arith.mulf %172, %154 : vector<16x32xf32>
    %174 = arith.addf %145, %173 : vector<16x32xf32>
    %c12 = arith.constant 12 : index
    %175 = memref.load %arg1[%c12] : memref<98xf32, #tpu.memory_space<smem>>
    %176 = vector.broadcast %175 : f32 to vector<16x32xf32>
    %177 = arith.mulf %176, %154 : vector<16x32xf32>
    %178 = arith.addf %148, %177 : vector<16x32xf32>
    %c13 = arith.constant 13 : index
    %179 = memref.load %arg1[%c13] : memref<98xf32, #tpu.memory_space<smem>>
    %180 = vector.broadcast %179 : f32 to vector<16x32xf32>
    %181 = arith.mulf %180, %154 : vector<16x32xf32>
    %182 = arith.addf %151, %181 : vector<16x32xf32>
    %c1_i32_52 = arith.constant 1 : i32
    %183 = tpu.dynamic_rotate %127 by %c1_i32_52 dim 0 : vector<16x32xf32>, i32 -> vector<16x32xf32>
    %cst_53 = arith.constant 0.000000e+00 : f32
    %184 = vector.broadcast %cst_53 : f32 to vector<16x32xf32>
    %185 = arith.select %44, %183, %184 : vector<16x32xi1>, vector<16x32xf32>
    %c14 = arith.constant 14 : index
    %186 = memref.load %arg1[%c14] : memref<98xf32, #tpu.memory_space<smem>>
    %187 = vector.broadcast %186 : f32 to vector<16x32xf32>
    %188 = arith.mulf %187, %185 : vector<16x32xf32>
    %189 = arith.addf %158, %188 : vector<16x32xf32>
    %c15 = arith.constant 15 : index
    %190 = memref.load %arg1[%c15] : memref<98xf32, #tpu.memory_space<smem>>
    %191 = vector.broadcast %190 : f32 to vector<16x32xf32>
    %192 = arith.mulf %191, %185 : vector<16x32xf32>
    %193 = arith.addf %162, %192 : vector<16x32xf32>
    %c16 = arith.constant 16 : index
    %194 = memref.load %arg1[%c16] : memref<98xf32, #tpu.memory_space<smem>>
    %195 = vector.broadcast %194 : f32 to vector<16x32xf32>
    %196 = arith.mulf %195, %185 : vector<16x32xf32>
    %197 = arith.addf %166, %196 : vector<16x32xf32>
    %c17 = arith.constant 17 : index
    %198 = memref.load %arg1[%c17] : memref<98xf32, #tpu.memory_space<smem>>
    %199 = vector.broadcast %198 : f32 to vector<16x32xf32>
    %200 = arith.mulf %199, %185 : vector<16x32xf32>
    %201 = arith.addf %170, %200 : vector<16x32xf32>
    %c18 = arith.constant 18 : index
    %202 = memref.load %arg1[%c18] : memref<98xf32, #tpu.memory_space<smem>>
    %203 = vector.broadcast %202 : f32 to vector<16x32xf32>
    %204 = arith.mulf %203, %185 : vector<16x32xf32>
    %205 = arith.addf %174, %204 : vector<16x32xf32>
    %c19 = arith.constant 19 : index
    %206 = memref.load %arg1[%c19] : memref<98xf32, #tpu.memory_space<smem>>
    %207 = vector.broadcast %206 : f32 to vector<16x32xf32>
    %208 = arith.mulf %207, %185 : vector<16x32xf32>
    %209 = arith.addf %178, %208 : vector<16x32xf32>
    %c20 = arith.constant 20 : index
    %210 = memref.load %arg1[%c20] : memref<98xf32, #tpu.memory_space<smem>>
    %211 = vector.broadcast %210 : f32 to vector<16x32xf32>
    %212 = arith.mulf %211, %185 : vector<16x32xf32>
    %213 = arith.addf %182, %212 : vector<16x32xf32>
    %c21 = arith.constant 21 : index
    %214 = memref.load %arg1[%c21] : memref<98xf32, #tpu.memory_space<smem>>
    %215 = vector.broadcast %214 : f32 to vector<16x32xf32>
    %216 = arith.mulf %215, %127 : vector<16x32xf32>
    %217 = arith.addf %189, %216 : vector<16x32xf32>
    %c22 = arith.constant 22 : index
    %218 = memref.load %arg1[%c22] : memref<98xf32, #tpu.memory_space<smem>>
    %219 = vector.broadcast %218 : f32 to vector<16x32xf32>
    %220 = arith.mulf %219, %127 : vector<16x32xf32>
    %221 = arith.addf %193, %220 : vector<16x32xf32>
    %c23 = arith.constant 23 : index
    %222 = memref.load %arg1[%c23] : memref<98xf32, #tpu.memory_space<smem>>
    %223 = vector.broadcast %222 : f32 to vector<16x32xf32>
    %224 = arith.mulf %223, %127 : vector<16x32xf32>
    %225 = arith.addf %197, %224 : vector<16x32xf32>
    %c24 = arith.constant 24 : index
    %226 = memref.load %arg1[%c24] : memref<98xf32, #tpu.memory_space<smem>>
    %227 = vector.broadcast %226 : f32 to vector<16x32xf32>
    %228 = arith.mulf %227, %127 : vector<16x32xf32>
    %229 = arith.addf %201, %228 : vector<16x32xf32>
    %c25 = arith.constant 25 : index
    %230 = memref.load %arg1[%c25] : memref<98xf32, #tpu.memory_space<smem>>
    %231 = vector.broadcast %230 : f32 to vector<16x32xf32>
    %232 = arith.mulf %231, %127 : vector<16x32xf32>
    %233 = arith.addf %205, %232 : vector<16x32xf32>
    %c26 = arith.constant 26 : index
    %234 = memref.load %arg1[%c26] : memref<98xf32, #tpu.memory_space<smem>>
    %235 = vector.broadcast %234 : f32 to vector<16x32xf32>
    %236 = arith.mulf %235, %127 : vector<16x32xf32>
    %237 = arith.addf %209, %236 : vector<16x32xf32>
    %c27 = arith.constant 27 : index
    %238 = memref.load %arg1[%c27] : memref<98xf32, #tpu.memory_space<smem>>
    %239 = vector.broadcast %238 : f32 to vector<16x32xf32>
    %240 = arith.mulf %239, %127 : vector<16x32xf32>
    %241 = arith.addf %213, %240 : vector<16x32xf32>
    %c15_i32 = arith.constant 15 : i32
    %242 = tpu.dynamic_rotate %127 by %c15_i32 dim 0 : vector<16x32xf32>, i32 -> vector<16x32xf32>
    %cst_54 = arith.constant 0.000000e+00 : f32
    %243 = vector.broadcast %cst_54 : f32 to vector<16x32xf32>
    %244 = arith.select %53, %242, %243 : vector<16x32xi1>, vector<16x32xf32>
    %c28 = arith.constant 28 : index
    %245 = memref.load %arg1[%c28] : memref<98xf32, #tpu.memory_space<smem>>
    %246 = vector.broadcast %245 : f32 to vector<16x32xf32>
    %247 = arith.mulf %246, %244 : vector<16x32xf32>
    %248 = arith.addf %217, %247 : vector<16x32xf32>
    %c29 = arith.constant 29 : index
    %249 = memref.load %arg1[%c29] : memref<98xf32, #tpu.memory_space<smem>>
    %250 = vector.broadcast %249 : f32 to vector<16x32xf32>
    %251 = arith.mulf %250, %244 : vector<16x32xf32>
    %252 = arith.addf %221, %251 : vector<16x32xf32>
    %c30 = arith.constant 30 : index
    %253 = memref.load %arg1[%c30] : memref<98xf32, #tpu.memory_space<smem>>
    %254 = vector.broadcast %253 : f32 to vector<16x32xf32>
    %255 = arith.mulf %254, %244 : vector<16x32xf32>
    %256 = arith.addf %225, %255 : vector<16x32xf32>
    %c31 = arith.constant 31 : index
    %257 = memref.load %arg1[%c31] : memref<98xf32, #tpu.memory_space<smem>>
    %258 = vector.broadcast %257 : f32 to vector<16x32xf32>
    %259 = arith.mulf %258, %244 : vector<16x32xf32>
    %260 = arith.addf %229, %259 : vector<16x32xf32>
    %c32 = arith.constant 32 : index
    %261 = memref.load %arg1[%c32] : memref<98xf32, #tpu.memory_space<smem>>
    %262 = vector.broadcast %261 : f32 to vector<16x32xf32>
    %263 = arith.mulf %262, %244 : vector<16x32xf32>
    %264 = arith.addf %233, %263 : vector<16x32xf32>
    %c33 = arith.constant 33 : index
    %265 = memref.load %arg1[%c33] : memref<98xf32, #tpu.memory_space<smem>>
    %266 = vector.broadcast %265 : f32 to vector<16x32xf32>
    %267 = arith.mulf %266, %244 : vector<16x32xf32>
    %268 = arith.addf %237, %267 : vector<16x32xf32>
    %c34 = arith.constant 34 : index
    %269 = memref.load %arg1[%c34] : memref<98xf32, #tpu.memory_space<smem>>
    %270 = vector.broadcast %269 : f32 to vector<16x32xf32>
    %271 = arith.mulf %270, %244 : vector<16x32xf32>
    %272 = arith.addf %241, %271 : vector<16x32xf32>
    %c14_i32 = arith.constant 14 : i32
    %273 = tpu.dynamic_rotate %127 by %c14_i32 dim 0 : vector<16x32xf32>, i32 -> vector<16x32xf32>
    %cst_55 = arith.constant 0.000000e+00 : f32
    %274 = vector.broadcast %cst_55 : f32 to vector<16x32xf32>
    %275 = arith.select %62, %273, %274 : vector<16x32xi1>, vector<16x32xf32>
    %c35 = arith.constant 35 : index
    %276 = memref.load %arg1[%c35] : memref<98xf32, #tpu.memory_space<smem>>
    %277 = vector.broadcast %276 : f32 to vector<16x32xf32>
    %278 = arith.mulf %277, %275 : vector<16x32xf32>
    %279 = arith.addf %248, %278 : vector<16x32xf32>
    %c36 = arith.constant 36 : index
    %280 = memref.load %arg1[%c36] : memref<98xf32, #tpu.memory_space<smem>>
    %281 = vector.broadcast %280 : f32 to vector<16x32xf32>
    %282 = arith.mulf %281, %275 : vector<16x32xf32>
    %283 = arith.addf %252, %282 : vector<16x32xf32>
    %c37 = arith.constant 37 : index
    %284 = memref.load %arg1[%c37] : memref<98xf32, #tpu.memory_space<smem>>
    %285 = vector.broadcast %284 : f32 to vector<16x32xf32>
    %286 = arith.mulf %285, %275 : vector<16x32xf32>
    %287 = arith.addf %256, %286 : vector<16x32xf32>
    %c38 = arith.constant 38 : index
    %288 = memref.load %arg1[%c38] : memref<98xf32, #tpu.memory_space<smem>>
    %289 = vector.broadcast %288 : f32 to vector<16x32xf32>
    %290 = arith.mulf %289, %275 : vector<16x32xf32>
    %291 = arith.addf %260, %290 : vector<16x32xf32>
    %c39 = arith.constant 39 : index
    %292 = memref.load %arg1[%c39] : memref<98xf32, #tpu.memory_space<smem>>
    %293 = vector.broadcast %292 : f32 to vector<16x32xf32>
    %294 = arith.mulf %293, %275 : vector<16x32xf32>
    %295 = arith.addf %264, %294 : vector<16x32xf32>
    %c40 = arith.constant 40 : index
    %296 = memref.load %arg1[%c40] : memref<98xf32, #tpu.memory_space<smem>>
    %297 = vector.broadcast %296 : f32 to vector<16x32xf32>
    %298 = arith.mulf %297, %275 : vector<16x32xf32>
    %299 = arith.addf %268, %298 : vector<16x32xf32>
    %c41 = arith.constant 41 : index
    %300 = memref.load %arg1[%c41] : memref<98xf32, #tpu.memory_space<smem>>
    %301 = vector.broadcast %300 : f32 to vector<16x32xf32>
    %302 = arith.mulf %301, %275 : vector<16x32xf32>
    %303 = arith.addf %272, %302 : vector<16x32xf32>
    %c13_i32 = arith.constant 13 : i32
    %304 = tpu.dynamic_rotate %127 by %c13_i32 dim 0 : vector<16x32xf32>, i32 -> vector<16x32xf32>
    %cst_56 = arith.constant 0.000000e+00 : f32
    %305 = vector.broadcast %cst_56 : f32 to vector<16x32xf32>
    %306 = arith.select %71, %304, %305 : vector<16x32xi1>, vector<16x32xf32>
    %c42 = arith.constant 42 : index
    %307 = memref.load %arg1[%c42] : memref<98xf32, #tpu.memory_space<smem>>
    %308 = vector.broadcast %307 : f32 to vector<16x32xf32>
    %309 = arith.mulf %308, %306 : vector<16x32xf32>
    %310 = arith.addf %279, %309 : vector<16x32xf32>
    %c43 = arith.constant 43 : index
    %311 = memref.load %arg1[%c43] : memref<98xf32, #tpu.memory_space<smem>>
    %312 = vector.broadcast %311 : f32 to vector<16x32xf32>
    %313 = arith.mulf %312, %306 : vector<16x32xf32>
    %314 = arith.addf %283, %313 : vector<16x32xf32>
    %c44 = arith.constant 44 : index
    %315 = memref.load %arg1[%c44] : memref<98xf32, #tpu.memory_space<smem>>
    %316 = vector.broadcast %315 : f32 to vector<16x32xf32>
    %317 = arith.mulf %316, %306 : vector<16x32xf32>
    %318 = arith.addf %287, %317 : vector<16x32xf32>
    %c45 = arith.constant 45 : index
    %319 = memref.load %arg1[%c45] : memref<98xf32, #tpu.memory_space<smem>>
    %320 = vector.broadcast %319 : f32 to vector<16x32xf32>
    %321 = arith.mulf %320, %306 : vector<16x32xf32>
    %322 = arith.addf %291, %321 : vector<16x32xf32>
    %c46 = arith.constant 46 : index
    %323 = memref.load %arg1[%c46] : memref<98xf32, #tpu.memory_space<smem>>
    %324 = vector.broadcast %323 : f32 to vector<16x32xf32>
    %325 = arith.mulf %324, %306 : vector<16x32xf32>
    %326 = arith.addf %295, %325 : vector<16x32xf32>
    %c47 = arith.constant 47 : index
    %327 = memref.load %arg1[%c47] : memref<98xf32, #tpu.memory_space<smem>>
    %328 = vector.broadcast %327 : f32 to vector<16x32xf32>
    %329 = arith.mulf %328, %306 : vector<16x32xf32>
    %330 = arith.addf %299, %329 : vector<16x32xf32>
    %c48 = arith.constant 48 : index
    %331 = memref.load %arg1[%c48] : memref<98xf32, #tpu.memory_space<smem>>
    %332 = vector.broadcast %331 : f32 to vector<16x32xf32>
    %333 = arith.mulf %332, %306 : vector<16x32xf32>
    %334 = arith.addf %303, %333 : vector<16x32xf32>
    %c1_57 = arith.constant 1 : index
    %c0_58 = arith.constant 0 : index
    %c0_59 = arith.constant 0 : index
    %335 = vector.load %arg2[%c1_57, %c0_58, %c0_59] : memref<2x16x32xf32, #tpu.memory_space<vmem>>, vector<1x16x32xf32>
    %336 = vector.shape_cast %335 : vector<1x16x32xf32> to vector<16x32xf32>
    %c3_i32_60 = arith.constant 3 : i32
    %337 = tpu.dynamic_rotate %336 by %c3_i32_60 dim 0 : vector<16x32xf32>, i32 -> vector<16x32xf32>
    %cst_61 = arith.constant 0.000000e+00 : f32
    %338 = vector.broadcast %cst_61 : f32 to vector<16x32xf32>
    %339 = arith.select %26, %337, %338 : vector<16x32xi1>, vector<16x32xf32>
    %c49 = arith.constant 49 : index
    %340 = memref.load %arg1[%c49] : memref<98xf32, #tpu.memory_space<smem>>
    %341 = vector.broadcast %340 : f32 to vector<16x32xf32>
    %342 = arith.mulf %341, %339 : vector<16x32xf32>
    %343 = arith.addf %310, %342 : vector<16x32xf32>
    %c50 = arith.constant 50 : index
    %344 = memref.load %arg1[%c50] : memref<98xf32, #tpu.memory_space<smem>>
    %345 = vector.broadcast %344 : f32 to vector<16x32xf32>
    %346 = arith.mulf %345, %339 : vector<16x32xf32>
    %347 = arith.addf %314, %346 : vector<16x32xf32>
    %c51 = arith.constant 51 : index
    %348 = memref.load %arg1[%c51] : memref<98xf32, #tpu.memory_space<smem>>
    %349 = vector.broadcast %348 : f32 to vector<16x32xf32>
    %350 = arith.mulf %349, %339 : vector<16x32xf32>
    %351 = arith.addf %318, %350 : vector<16x32xf32>
    %c52 = arith.constant 52 : index
    %352 = memref.load %arg1[%c52] : memref<98xf32, #tpu.memory_space<smem>>
    %353 = vector.broadcast %352 : f32 to vector<16x32xf32>
    %354 = arith.mulf %353, %339 : vector<16x32xf32>
    %355 = arith.addf %322, %354 : vector<16x32xf32>
    %c53 = arith.constant 53 : index
    %356 = memref.load %arg1[%c53] : memref<98xf32, #tpu.memory_space<smem>>
    %357 = vector.broadcast %356 : f32 to vector<16x32xf32>
    %358 = arith.mulf %357, %339 : vector<16x32xf32>
    %359 = arith.addf %326, %358 : vector<16x32xf32>
    %c54 = arith.constant 54 : index
    %360 = memref.load %arg1[%c54] : memref<98xf32, #tpu.memory_space<smem>>
    %361 = vector.broadcast %360 : f32 to vector<16x32xf32>
    %362 = arith.mulf %361, %339 : vector<16x32xf32>
    %363 = arith.addf %330, %362 : vector<16x32xf32>
    %c55 = arith.constant 55 : index
    %364 = memref.load %arg1[%c55] : memref<98xf32, #tpu.memory_space<smem>>
    %365 = vector.broadcast %364 : f32 to vector<16x32xf32>
    %366 = arith.mulf %365, %339 : vector<16x32xf32>
    %367 = arith.addf %334, %366 : vector<16x32xf32>
    %c2_i32_62 = arith.constant 2 : i32
    %368 = tpu.dynamic_rotate %336 by %c2_i32_62 dim 0 : vector<16x32xf32>, i32 -> vector<16x32xf32>
    %cst_63 = arith.constant 0.000000e+00 : f32
    %369 = vector.broadcast %cst_63 : f32 to vector<16x32xf32>
    %370 = arith.select %35, %368, %369 : vector<16x32xi1>, vector<16x32xf32>
    %c56 = arith.constant 56 : index
    %371 = memref.load %arg1[%c56] : memref<98xf32, #tpu.memory_space<smem>>
    %372 = vector.broadcast %371 : f32 to vector<16x32xf32>
    %373 = arith.mulf %372, %370 : vector<16x32xf32>
    %374 = arith.addf %343, %373 : vector<16x32xf32>
    %c57 = arith.constant 57 : index
    %375 = memref.load %arg1[%c57] : memref<98xf32, #tpu.memory_space<smem>>
    %376 = vector.broadcast %375 : f32 to vector<16x32xf32>
    %377 = arith.mulf %376, %370 : vector<16x32xf32>
    %378 = arith.addf %347, %377 : vector<16x32xf32>
    %c58 = arith.constant 58 : index
    %379 = memref.load %arg1[%c58] : memref<98xf32, #tpu.memory_space<smem>>
    %380 = vector.broadcast %379 : f32 to vector<16x32xf32>
    %381 = arith.mulf %380, %370 : vector<16x32xf32>
    %382 = arith.addf %351, %381 : vector<16x32xf32>
    %c59 = arith.constant 59 : index
    %383 = memref.load %arg1[%c59] : memref<98xf32, #tpu.memory_space<smem>>
    %384 = vector.broadcast %383 : f32 to vector<16x32xf32>
    %385 = arith.mulf %384, %370 : vector<16x32xf32>
    %386 = arith.addf %355, %385 : vector<16x32xf32>
    %c60 = arith.constant 60 : index
    %387 = memref.load %arg1[%c60] : memref<98xf32, #tpu.memory_space<smem>>
    %388 = vector.broadcast %387 : f32 to vector<16x32xf32>
    %389 = arith.mulf %388, %370 : vector<16x32xf32>
    %390 = arith.addf %359, %389 : vector<16x32xf32>
    %c61 = arith.constant 61 : index
    %391 = memref.load %arg1[%c61] : memref<98xf32, #tpu.memory_space<smem>>
    %392 = vector.broadcast %391 : f32 to vector<16x32xf32>
    %393 = arith.mulf %392, %370 : vector<16x32xf32>
    %394 = arith.addf %363, %393 : vector<16x32xf32>
    %c62 = arith.constant 62 : index
    %395 = memref.load %arg1[%c62] : memref<98xf32, #tpu.memory_space<smem>>
    %396 = vector.broadcast %395 : f32 to vector<16x32xf32>
    %397 = arith.mulf %396, %370 : vector<16x32xf32>
    %398 = arith.addf %367, %397 : vector<16x32xf32>
    %c1_i32_64 = arith.constant 1 : i32
    %399 = tpu.dynamic_rotate %336 by %c1_i32_64 dim 0 : vector<16x32xf32>, i32 -> vector<16x32xf32>
    %cst_65 = arith.constant 0.000000e+00 : f32
    %400 = vector.broadcast %cst_65 : f32 to vector<16x32xf32>
    %401 = arith.select %44, %399, %400 : vector<16x32xi1>, vector<16x32xf32>
    %c63 = arith.constant 63 : index
    %402 = memref.load %arg1[%c63] : memref<98xf32, #tpu.memory_space<smem>>
    %403 = vector.broadcast %402 : f32 to vector<16x32xf32>
    %404 = arith.mulf %403, %401 : vector<16x32xf32>
    %405 = arith.addf %374, %404 : vector<16x32xf32>
    %c64 = arith.constant 64 : index
    %406 = memref.load %arg1[%c64] : memref<98xf32, #tpu.memory_space<smem>>
    %407 = vector.broadcast %406 : f32 to vector<16x32xf32>
    %408 = arith.mulf %407, %401 : vector<16x32xf32>
    %409 = arith.addf %378, %408 : vector<16x32xf32>
    %c65 = arith.constant 65 : index
    %410 = memref.load %arg1[%c65] : memref<98xf32, #tpu.memory_space<smem>>
    %411 = vector.broadcast %410 : f32 to vector<16x32xf32>
    %412 = arith.mulf %411, %401 : vector<16x32xf32>
    %413 = arith.addf %382, %412 : vector<16x32xf32>
    %c66 = arith.constant 66 : index
    %414 = memref.load %arg1[%c66] : memref<98xf32, #tpu.memory_space<smem>>
    %415 = vector.broadcast %414 : f32 to vector<16x32xf32>
    %416 = arith.mulf %415, %401 : vector<16x32xf32>
    %417 = arith.addf %386, %416 : vector<16x32xf32>
    %c67 = arith.constant 67 : index
    %418 = memref.load %arg1[%c67] : memref<98xf32, #tpu.memory_space<smem>>
    %419 = vector.broadcast %418 : f32 to vector<16x32xf32>
    %420 = arith.mulf %419, %401 : vector<16x32xf32>
    %421 = arith.addf %390, %420 : vector<16x32xf32>
    %c68 = arith.constant 68 : index
    %422 = memref.load %arg1[%c68] : memref<98xf32, #tpu.memory_space<smem>>
    %423 = vector.broadcast %422 : f32 to vector<16x32xf32>
    %424 = arith.mulf %423, %401 : vector<16x32xf32>
    %425 = arith.addf %394, %424 : vector<16x32xf32>
    %c69 = arith.constant 69 : index
    %426 = memref.load %arg1[%c69] : memref<98xf32, #tpu.memory_space<smem>>
    %427 = vector.broadcast %426 : f32 to vector<16x32xf32>
    %428 = arith.mulf %427, %401 : vector<16x32xf32>
    %429 = arith.addf %398, %428 : vector<16x32xf32>
    %c70 = arith.constant 70 : index
    %430 = memref.load %arg1[%c70] : memref<98xf32, #tpu.memory_space<smem>>
    %431 = vector.broadcast %430 : f32 to vector<16x32xf32>
    %432 = arith.mulf %431, %336 : vector<16x32xf32>
    %433 = arith.addf %405, %432 : vector<16x32xf32>
    %c71 = arith.constant 71 : index
    %434 = memref.load %arg1[%c71] : memref<98xf32, #tpu.memory_space<smem>>
    %435 = vector.broadcast %434 : f32 to vector<16x32xf32>
    %436 = arith.mulf %435, %336 : vector<16x32xf32>
    %437 = arith.addf %409, %436 : vector<16x32xf32>
    %c72 = arith.constant 72 : index
    %438 = memref.load %arg1[%c72] : memref<98xf32, #tpu.memory_space<smem>>
    %439 = vector.broadcast %438 : f32 to vector<16x32xf32>
    %440 = arith.mulf %439, %336 : vector<16x32xf32>
    %441 = arith.addf %413, %440 : vector<16x32xf32>
    %c73 = arith.constant 73 : index
    %442 = memref.load %arg1[%c73] : memref<98xf32, #tpu.memory_space<smem>>
    %443 = vector.broadcast %442 : f32 to vector<16x32xf32>
    %444 = arith.mulf %443, %336 : vector<16x32xf32>
    %445 = arith.addf %417, %444 : vector<16x32xf32>
    %c74 = arith.constant 74 : index
    %446 = memref.load %arg1[%c74] : memref<98xf32, #tpu.memory_space<smem>>
    %447 = vector.broadcast %446 : f32 to vector<16x32xf32>
    %448 = arith.mulf %447, %336 : vector<16x32xf32>
    %449 = arith.addf %421, %448 : vector<16x32xf32>
    %c75 = arith.constant 75 : index
    %450 = memref.load %arg1[%c75] : memref<98xf32, #tpu.memory_space<smem>>
    %451 = vector.broadcast %450 : f32 to vector<16x32xf32>
    %452 = arith.mulf %451, %336 : vector<16x32xf32>
    %453 = arith.addf %425, %452 : vector<16x32xf32>
    %c76 = arith.constant 76 : index
    %454 = memref.load %arg1[%c76] : memref<98xf32, #tpu.memory_space<smem>>
    %455 = vector.broadcast %454 : f32 to vector<16x32xf32>
    %456 = arith.mulf %455, %336 : vector<16x32xf32>
    %457 = arith.addf %429, %456 : vector<16x32xf32>
    %c15_i32_66 = arith.constant 15 : i32
    %458 = tpu.dynamic_rotate %336 by %c15_i32_66 dim 0 : vector<16x32xf32>, i32 -> vector<16x32xf32>
    %cst_67 = arith.constant 0.000000e+00 : f32
    %459 = vector.broadcast %cst_67 : f32 to vector<16x32xf32>
    %460 = arith.select %53, %458, %459 : vector<16x32xi1>, vector<16x32xf32>
    %c77 = arith.constant 77 : index
    %461 = memref.load %arg1[%c77] : memref<98xf32, #tpu.memory_space<smem>>
    %462 = vector.broadcast %461 : f32 to vector<16x32xf32>
    %463 = arith.mulf %462, %460 : vector<16x32xf32>
    %464 = arith.addf %433, %463 : vector<16x32xf32>
    %c78 = arith.constant 78 : index
    %465 = memref.load %arg1[%c78] : memref<98xf32, #tpu.memory_space<smem>>
    %466 = vector.broadcast %465 : f32 to vector<16x32xf32>
    %467 = arith.mulf %466, %460 : vector<16x32xf32>
    %468 = arith.addf %437, %467 : vector<16x32xf32>
    %c79 = arith.constant 79 : index
    %469 = memref.load %arg1[%c79] : memref<98xf32, #tpu.memory_space<smem>>
    %470 = vector.broadcast %469 : f32 to vector<16x32xf32>
    %471 = arith.mulf %470, %460 : vector<16x32xf32>
    %472 = arith.addf %441, %471 : vector<16x32xf32>
    %c80 = arith.constant 80 : index
    %473 = memref.load %arg1[%c80] : memref<98xf32, #tpu.memory_space<smem>>
    %474 = vector.broadcast %473 : f32 to vector<16x32xf32>
    %475 = arith.mulf %474, %460 : vector<16x32xf32>
    %476 = arith.addf %445, %475 : vector<16x32xf32>
    %c81 = arith.constant 81 : index
    %477 = memref.load %arg1[%c81] : memref<98xf32, #tpu.memory_space<smem>>
    %478 = vector.broadcast %477 : f32 to vector<16x32xf32>
    %479 = arith.mulf %478, %460 : vector<16x32xf32>
    %480 = arith.addf %449, %479 : vector<16x32xf32>
    %c82 = arith.constant 82 : index
    %481 = memref.load %arg1[%c82] : memref<98xf32, #tpu.memory_space<smem>>
    %482 = vector.broadcast %481 : f32 to vector<16x32xf32>
    %483 = arith.mulf %482, %460 : vector<16x32xf32>
    %484 = arith.addf %453, %483 : vector<16x32xf32>
    %c83 = arith.constant 83 : index
    %485 = memref.load %arg1[%c83] : memref<98xf32, #tpu.memory_space<smem>>
    %486 = vector.broadcast %485 : f32 to vector<16x32xf32>
    %487 = arith.mulf %486, %460 : vector<16x32xf32>
    %488 = arith.addf %457, %487 : vector<16x32xf32>
    %c14_i32_68 = arith.constant 14 : i32
    %489 = tpu.dynamic_rotate %336 by %c14_i32_68 dim 0 : vector<16x32xf32>, i32 -> vector<16x32xf32>
    %cst_69 = arith.constant 0.000000e+00 : f32
    %490 = vector.broadcast %cst_69 : f32 to vector<16x32xf32>
    %491 = arith.select %62, %489, %490 : vector<16x32xi1>, vector<16x32xf32>
    %c84 = arith.constant 84 : index
    %492 = memref.load %arg1[%c84] : memref<98xf32, #tpu.memory_space<smem>>
    %493 = vector.broadcast %492 : f32 to vector<16x32xf32>
    %494 = arith.mulf %493, %491 : vector<16x32xf32>
    %495 = arith.addf %464, %494 : vector<16x32xf32>
    %c85 = arith.constant 85 : index
    %496 = memref.load %arg1[%c85] : memref<98xf32, #tpu.memory_space<smem>>
    %497 = vector.broadcast %496 : f32 to vector<16x32xf32>
    %498 = arith.mulf %497, %491 : vector<16x32xf32>
    %499 = arith.addf %468, %498 : vector<16x32xf32>
    %c86 = arith.constant 86 : index
    %500 = memref.load %arg1[%c86] : memref<98xf32, #tpu.memory_space<smem>>
    %501 = vector.broadcast %500 : f32 to vector<16x32xf32>
    %502 = arith.mulf %501, %491 : vector<16x32xf32>
    %503 = arith.addf %472, %502 : vector<16x32xf32>
    %c87 = arith.constant 87 : index
    %504 = memref.load %arg1[%c87] : memref<98xf32, #tpu.memory_space<smem>>
    %505 = vector.broadcast %504 : f32 to vector<16x32xf32>
    %506 = arith.mulf %505, %491 : vector<16x32xf32>
    %507 = arith.addf %476, %506 : vector<16x32xf32>
    %c88 = arith.constant 88 : index
    %508 = memref.load %arg1[%c88] : memref<98xf32, #tpu.memory_space<smem>>
    %509 = vector.broadcast %508 : f32 to vector<16x32xf32>
    %510 = arith.mulf %509, %491 : vector<16x32xf32>
    %511 = arith.addf %480, %510 : vector<16x32xf32>
    %c89 = arith.constant 89 : index
    %512 = memref.load %arg1[%c89] : memref<98xf32, #tpu.memory_space<smem>>
    %513 = vector.broadcast %512 : f32 to vector<16x32xf32>
    %514 = arith.mulf %513, %491 : vector<16x32xf32>
    %515 = arith.addf %484, %514 : vector<16x32xf32>
    %c90 = arith.constant 90 : index
    %516 = memref.load %arg1[%c90] : memref<98xf32, #tpu.memory_space<smem>>
    %517 = vector.broadcast %516 : f32 to vector<16x32xf32>
    %518 = arith.mulf %517, %491 : vector<16x32xf32>
    %519 = arith.addf %488, %518 : vector<16x32xf32>
    %c13_i32_70 = arith.constant 13 : i32
    %520 = tpu.dynamic_rotate %336 by %c13_i32_70 dim 0 : vector<16x32xf32>, i32 -> vector<16x32xf32>
    %cst_71 = arith.constant 0.000000e+00 : f32
    %521 = vector.broadcast %cst_71 : f32 to vector<16x32xf32>
    %522 = arith.select %71, %520, %521 : vector<16x32xi1>, vector<16x32xf32>
    %c91 = arith.constant 91 : index
    %523 = memref.load %arg1[%c91] : memref<98xf32, #tpu.memory_space<smem>>
    %524 = vector.broadcast %523 : f32 to vector<16x32xf32>
    %525 = arith.mulf %524, %522 : vector<16x32xf32>
    %526 = arith.addf %495, %525 : vector<16x32xf32>
    %c92 = arith.constant 92 : index
    %527 = memref.load %arg1[%c92] : memref<98xf32, #tpu.memory_space<smem>>
    %528 = vector.broadcast %527 : f32 to vector<16x32xf32>
    %529 = arith.mulf %528, %522 : vector<16x32xf32>
    %530 = arith.addf %499, %529 : vector<16x32xf32>
    %c93 = arith.constant 93 : index
    %531 = memref.load %arg1[%c93] : memref<98xf32, #tpu.memory_space<smem>>
    %532 = vector.broadcast %531 : f32 to vector<16x32xf32>
    %533 = arith.mulf %532, %522 : vector<16x32xf32>
    %534 = arith.addf %503, %533 : vector<16x32xf32>
    %c94 = arith.constant 94 : index
    %535 = memref.load %arg1[%c94] : memref<98xf32, #tpu.memory_space<smem>>
    %536 = vector.broadcast %535 : f32 to vector<16x32xf32>
    %537 = arith.mulf %536, %522 : vector<16x32xf32>
    %538 = arith.addf %507, %537 : vector<16x32xf32>
    %c95 = arith.constant 95 : index
    %539 = memref.load %arg1[%c95] : memref<98xf32, #tpu.memory_space<smem>>
    %540 = vector.broadcast %539 : f32 to vector<16x32xf32>
    %541 = arith.mulf %540, %522 : vector<16x32xf32>
    %542 = arith.addf %511, %541 : vector<16x32xf32>
    %c96 = arith.constant 96 : index
    %543 = memref.load %arg1[%c96] : memref<98xf32, #tpu.memory_space<smem>>
    %544 = vector.broadcast %543 : f32 to vector<16x32xf32>
    %545 = arith.mulf %544, %522 : vector<16x32xf32>
    %546 = arith.addf %515, %545 : vector<16x32xf32>
    %c97 = arith.constant 97 : index
    %547 = memref.load %arg1[%c97] : memref<98xf32, #tpu.memory_space<smem>>
    %548 = vector.broadcast %547 : f32 to vector<16x32xf32>
    %549 = arith.mulf %548, %522 : vector<16x32xf32>
    %550 = arith.addf %519, %549 : vector<16x32xf32>
    %c3_i32_72 = arith.constant 3 : i32
    %551 = tpu.dynamic_rotate %526 by %c3_i32_72 dim 1 : vector<16x32xf32>, i32 -> vector<16x32xf32>
    %cst_73 = arith.constant 0.000000e+00 : f32
    %552 = vector.broadcast %cst_73 : f32 to vector<16x32xf32>
    %553 = arith.select %80, %551, %552 : vector<16x32xi1>, vector<16x32xf32>
    %554 = arith.addf %538, %553 : vector<16x32xf32>
    %c2_i32_74 = arith.constant 2 : i32
    %555 = tpu.dynamic_rotate %530 by %c2_i32_74 dim 1 : vector<16x32xf32>, i32 -> vector<16x32xf32>
    %cst_75 = arith.constant 0.000000e+00 : f32
    %556 = vector.broadcast %cst_75 : f32 to vector<16x32xf32>
    %557 = arith.select %89, %555, %556 : vector<16x32xi1>, vector<16x32xf32>
    %558 = arith.addf %554, %557 : vector<16x32xf32>
    %c1_i32_76 = arith.constant 1 : i32
    %559 = tpu.dynamic_rotate %534 by %c1_i32_76 dim 1 : vector<16x32xf32>, i32 -> vector<16x32xf32>
    %cst_77 = arith.constant 0.000000e+00 : f32
    %560 = vector.broadcast %cst_77 : f32 to vector<16x32xf32>
    %561 = arith.select %98, %559, %560 : vector<16x32xi1>, vector<16x32xf32>
    %562 = arith.addf %558, %561 : vector<16x32xf32>
    %c31_i32 = arith.constant 31 : i32
    %563 = tpu.dynamic_rotate %542 by %c31_i32 dim 1 : vector<16x32xf32>, i32 -> vector<16x32xf32>
    %cst_78 = arith.constant 0.000000e+00 : f32
    %564 = vector.broadcast %cst_78 : f32 to vector<16x32xf32>
    %565 = arith.select %107, %563, %564 : vector<16x32xi1>, vector<16x32xf32>
    %566 = arith.addf %562, %565 : vector<16x32xf32>
    %c30_i32 = arith.constant 30 : i32
    %567 = tpu.dynamic_rotate %546 by %c30_i32 dim 1 : vector<16x32xf32>, i32 -> vector<16x32xf32>
    %cst_79 = arith.constant 0.000000e+00 : f32
    %568 = vector.broadcast %cst_79 : f32 to vector<16x32xf32>
    %569 = arith.select %116, %567, %568 : vector<16x32xi1>, vector<16x32xf32>
    %570 = arith.addf %566, %569 : vector<16x32xf32>
    %c29_i32 = arith.constant 29 : i32
    %571 = tpu.dynamic_rotate %550 by %c29_i32 dim 1 : vector<16x32xf32>, i32 -> vector<16x32xf32>
    %cst_80 = arith.constant 0.000000e+00 : f32
    %572 = vector.broadcast %cst_80 : f32 to vector<16x32xf32>
    %573 = arith.select %125, %571, %572 : vector<16x32xi1>, vector<16x32xf32>
    %574 = arith.addf %570, %573 : vector<16x32xf32>
    %575 = arith.negf %574 : vector<16x32xf32>
    %576 = math.exp %575 : vector<16x32xf32>
    %cst_81 = arith.constant 1.000000e+00 : f32
    %577 = vector.broadcast %cst_81 : f32 to vector<16x32xf32>
    %578 = arith.addf %577, %576 : vector<16x32xf32>
    %579 = arith.divf %577, %578 : vector<16x32xf32>
    %c0_82 = arith.constant 0 : index
    %c0_83 = arith.constant 0 : index
    %580 = vector.load %arg3[%c0_82, %c0_83] : memref<16x32xf32, #tpu.memory_space<vmem>>, vector<16x32xf32>
    tpu.vector_store %arg3[%c0_82, %c0_83], %579 {strides = array<i32>} : memref<16x32xf32, #tpu.memory_space<vmem>>, vector<16x32xf32>,
    return
  }
  func.func @transform_0(%arg0: i32) -> i32 {
    %c0_i32 = arith.constant 0 : i32
    %c0_i32_0 = arith.constant 0 : i32
    return %c0_i32 : i32
  }
  func.func @transform_1(%arg0: i32) -> (i32, i32, i32) {
    %c0_i32 = arith.constant 0 : i32
    %c0_i32_0 = arith.constant 0 : i32
    %c0_i32_1 = arith.constant 0 : i32
    return %c0_i32, %c0_i32_0, %arg0 : i32, i32, i32
  }
  func.func @transform_2(%arg0: i32) -> (i32, i32) {
    %c0_i32 = arith.constant 0 : i32
    %c0_i32_0 = arith.constant 0 : i32
    return %c0_i32, %arg0 : i32, i32
  }
}

</mosaic_0001>

<bundles_post_ra>
// kernel: spatial_attention.2
= control target key start
LH: loop header
LB: loop body
LE: loop exit
PB: predicated region body
PF: predicated region fallthrough
CT: control target
= control target key end

     0   :  { %8 = vsyncpa [#allocation3], 0  ;;  %s712_s0 = inlined_call_operand.hbm [shape: f32[2,4,16,16], index: 0, kind: input, shape index: {}]   ;;  %s713_s1 = inlined_call_operand.vmem [shape: f32[2,16,16], index: 1, kind: output, shape index: {0}]   ;;  %s714_s2 = inlined_call_operand.vmem [shape: f32[2,16,16], index: 2, kind: output, shape index: {1}]  }
   0x1   :  { %10 = vsyncpa [#allocation3 + $0x1], 0  ;;  %s545_s9 = smov 0   ;;  %s547_s10 = smov 0  }
   0x2   :  { %s549_s11 = smov 0   ;;  %s551_s12 = smov 0  }
   0x3   :  { %s553_s13 = smov 0   ;;  %s555_s14 = smov 0  }
   0x4 LB: > { %s360_s15 = sadd.s32 4294967295, %s523_s14   ;;  %s28_s16 = sadd.s32 1, %s519_s13  ;;  %s523_s14 = sphi %s555_s14, %s16_s14   ;;  %s519_s13 = sphi %s553_s13, %s722_s13   ;;  %s515_s12 = sphi %s551_s12, %s721_s12   ;;  %s511_s11 = sphi %s549_s11, %s720_s11   ;;  %s507_s10 = sphi %s547_s10, %s719_s10   ;;  %s503_s9 = sphi %s545_s9, %s718_s9  }
   0x5   : > { %p30_p0 = scmp.ge.s32.totalorder %s28_s16, 2  ;;  %s37_s17 = sadd.s32 1, %s511_s11 }
   0x6   : > { %p44_p1 = scmp.ne.s32.totalorder %s511_s11, %s507_s10  ;;  %p45_p2 = scmp.eq.s32.totalorder %s523_s14, 0 }
   0x7   : > { %s724_s16 = smov (%p30_p0, %s28_s16), 0  ;;  %p50_p4 = scmp.ne.s32.totalorder %s507_s10, %s503_s9 }
   0x8   : > { %p581_p3 = por %p45_p2, %p44_p1  ;;  %s32_s19 = ssub.s32 %s519_s13, %s724_s16 }
   0x9   : > { %p51_p5 = scmp.eq.s32.totalorder %s360_s15, 0  ;;  %p35_p6 = scmp.eq.s32.totalorder %s32_s19, 0 }
   0xa   : > { %p390_p8 = scmp.lt.s32.totalorder %s523_s14, 2  ;;  %s126_s22 = sand.u32 1, %s511_s11  }
   0xb   : > { %p588_p7 = por %p51_p5, %p50_p4  ;;  %s381_s23 = sshll.u32 %s519_s13, 10 }
   0xc   : > { %s594_s21 = scalar_select %p35_p6, %s511_s11, %s37_s17  }
   0xd   : > { %s364_s24 = sshll.u32 %s126_s22, 6  ;;  %s601_s27 = scalar_lea.hbm %s712_s0, %s381_s23 }
   0xe   : > { %s130_s28 = scalar_lea.vmem [#allocation2], %s364_s24  ;;  %p605_p9 = pnand %p390_p8, %p581_p3 }
   0xf   : > { %s140_s29 = sshll.u32 %s130_s28, 4  ;;  %s611_s3 = scalar_lea.sflag [#allocation3], %s126_s22  ;;  %s609_s29 = int_to_ptr.vmem [resolvable:$true] %s140_s29 }
  0x10   : > { %s443_s4 = scalar_lea.hbm %s601_s27, 1024  ;;  %p445_p11 = pneg %p605_p9 }
  0x11   : > { %p444_p10 = scmp.ne.s32.totalorder %s601_s27, %s443_s4  ;;  %s448_s7 = scalar_lea.hbm %s712_s0, 2048 }
  0x12   : > { %p449_p0 = scmp.lt.u32.totalorder %s601_s27, %s712_s0  ;;  %p450_p1 = scmp.lt.u32.totalorder %s448_s7, %s443_s4 }
  0x13   : > { %p446_p12 = pnand %p445_p11, %p444_p10  ;;  %p452_p3 = scmp.lt.u32.totalorder %s443_s4, %s601_s27 }
  0x14   : > { %p451_p2 = por %p450_p1, %p449_p0 }
  0x15   : > { %p447_p13 = pneg %p446_p12 }
  0x16   : > { %p453_p4 = por %p452_p3, %p451_p2 }
  0x18   : > { %p454_p5 = pnand %p453_p4, %p447_p13 }
  0x1a   : > { %457 = shalt.err (!%p454_p5)
}
  0x1b   : > { %s458_s15 = scalar_lea.vmem %s609_s29, 1024  ;;  %s525_s17 = smov [#allocation2]  }
  0x1c   : > { %p459_p6 = scmp.ne.s32.totalorder %s609_s29, %s458_s15  ;;  %s463_s18 = sshll.u32 %s525_s17, 4  ;;  %s464_s18 = int_to_ptr.vmem [resolvable:$false] %s463_s18 }
  0x1d   : > { %s465_s19 = scalar_lea.vmem %s464_s18, 2048  ;;  %p466_p12 = scmp.lt.s32.totalorder %s609_s29, %s464_s18 }
  0x1e   : > { %p461_p8 = pnand %p459_p6, %p445_p11  ;;  %p467_p0 = scmp.lt.s32.totalorder %s465_s19, %s458_s15 }
  0x20   : > { %p462_p10 = pneg %p461_p8  ;;  %p468_p1 = por %p467_p0, %p466_p12 }
  0x22   : > { %p469_p2 = pnand %p468_p1, %p462_p10 }
  0x24   : > { %472 = shalt.err (!%p469_p2)
}
  0x25   : > { %s526_s22 = smov 128   ;;  %s527_s23 = smov 8  }
  0x26   : > { %389 = dma.hbm_to_vmem [thread:$0]  (!%p605_p9), %s601_s27, 1024, %s609_s29, %s611_s3, %s526_s22, %s526_s22, %s527_s23  }
  0x27   : > { %p367_p11 = scmp.ge.s32.totalorder %s523_s14, 1  ;;  %p148_p13 = scmp.lt.s32.totalorder %s523_s14, 3 }
  0x29   : > { %p149_p3 = pnand %p367_p11, %p148_p13 }
  0x2a   : > { %s154_s24 = sand.u32 (!%p149_p3), 1, %s507_s10  }
  0x2b   : > { %152 = sbr.rel (%p149_p3) target bundleno = 83 (0x53), region = 24  ;;  %s368_s25 = sshll.u32 (!%p149_p3), %s154_s24, 6 }
  0x2c   : > { %s155_s26 = scalar_lea.sflag (!%p149_p3), [#allocation3], %s154_s24  ;;  %s642_s28 = scalar_lea.vmem (!%p149_p3), [#allocation2], %s368_s25 }
  0x32   : > { %498 = dma.done.wait (%p588_p7), %s155_s26, 1024  }
  0x33   : > { %500 = vsyncadd (%p588_p7), %s155_s26, 4294966272  ;;  %p185_p9 = scmp.lt.s32.totalorder %s515_s12, 1  ;;  %vm199_vm0 = vcmask 130048   ;;  %v528_v0 = vmov 0.0   ;;  %v529_v1 = vmov -inf   ;;  %v208_v2 = vld [vmem:[%s642_s28] sm:$0xff] }
  0x34   : > { %v209_v3 = vld [vmem:[%s642_s28 + $0x8] sm:$0xff]  ;;  %v373_v4 = vld [vmem:[%s642_s28 + $0x10] sm:$0xff]  ;;  %v374_v5 = vld [vmem:[%s642_s28 + $0x18] sm:$0xff] }
  0x35   : > { %s726_s12 = smov (!%p185_p9, %s515_s12), 1  ;;  %v375_v13 = vld [vmem:[%s642_s28 + $0x20] sm:$0xff]  ;;  %v376_v14 = vld [vmem:[%s642_s28 + $0x28] sm:$0xff]  ;;  %v377_v19 = vld [vmem:[%s642_s28 + $0x30] sm:$0xff] }
  0x36   : > { %s382_s27 = sshll.u32 %s726_s12, 4  ;;  %v378_v20 = vld [vmem:[%s642_s28 + $0x38] sm:$0xff] }
  0x37   : > { %s653_s3 = scalar_lea.vmem %s713_s1, %s382_s27  ;;  %s658_s20 = scalar_lea.vmem %s714_s2, %s382_s27 }
  0x38   : > { %200 = vst.msk [vmem:[%s653_s3] sm:$0xff] %vm199_vm0, %v528_v0  ;;  %201 = vst.msk [vmem:[%s653_s3 + $0x8] sm:$0xff] %vm199_vm0, %v528_v0 }
  0x39   : > { %202 = vst.msk [vmem:[%s658_s20] sm:$0xff] %vm199_vm0, %v529_v1  ;;  %203 = vst.msk [vmem:[%s658_s20 + $0x8] sm:$0xff] %vm199_vm0, %v529_v1 }
  0x3f   : > { %v204_v6 = vld [vmem:[%s653_s3] sm:$0xff]  ;;  %v205_v7 = vld [vmem:[%s653_s3 + $0x8] sm:$0xff] }
  0x40   : > { %v206_v8 = vld [vmem:[%s658_s20] sm:$0xff]  ;;  %v210_v9 = vadd.f32 %v208_v2, %v204_v6  ;;  %v211_v10 = vadd.f32 %v209_v3, %v205_v7  ;;  %v207_v12 = vld [vmem:[%s658_s20 + $0x8] sm:$0xff] }
  0x41   : > { %v212_v11 = vmax.f32 %v206_v8, %v208_v2  ;;  %v213_v15 = vmax.f32 %v207_v12, %v209_v3 }
  0x42   : > { %v217_v16 = vadd.f32 %v373_v4, %v210_v9  ;;  %v218_v17 = vadd.f32 %v374_v5, %v211_v10 }
  0x43   : > { %v219_v18 = vmax.f32 %v212_v11, %v373_v4  ;;  %v220_v21 = vmax.f32 %v213_v15, %v374_v5 }
  0x44   : > { %v224_v22 = vadd.f32 %v375_v13, %v217_v16  ;;  %v225_v23 = vadd.f32 %v376_v14, %v218_v17 }
  0x45   : > { %v226_v24 = vmax.f32 %v219_v18, %v375_v13  ;;  %v227_v25 = vmax.f32 %v220_v21, %v376_v14 }
  0x46   : > { %v231_v26 = vadd.f32 %v377_v19, %v224_v22  ;;  %v232_v27 = vadd.f32 %v378_v20, %v225_v23 }
  0x47   : > { %v233_v28 = vmax.f32 %v226_v24, %v377_v19  ;;  %v234_v29 = vmax.f32 %v227_v25, %v378_v20 }
  0x48   : > { %236 = vst.msk [vmem:[%s653_s3] sm:$0xff] %vm199_vm0, %v231_v26  ;;  %237 = vst.msk [vmem:[%s653_s3 + $0x8] sm:$0xff] %vm199_vm0, %v232_v27 }
  0x49   : > { %238 = vst.msk [vmem:[%s658_s20] sm:$0xff] %vm199_vm0, %v233_v28  ;;  %239 = vst.msk [vmem:[%s658_s20 + $0x8] sm:$0xff] %vm199_vm0, %v234_v29 }
  0x4f   : > { %v243_v30 = vld [vmem:[%s653_s3] sm:$0xff]  ;;  %v244_v31 = vld [vmem:[%s653_s3 + $0x8] sm:$0xff] }
  0x50   : > { %v245_v32 = vmul.f32 0.25, %v243_v30  ;;  %v246_v33 = vmul.f32 0.25, %v244_v31 }
  0x52   : > { %247 = vst.msk [vmem:[%s653_s3] sm:$0xff] %vm199_vm0, %v245_v32  ;;  %248 = vst.msk [vmem:[%s653_s3 + $0x8] sm:$0xff] %vm199_vm0, %v246_v33 }
  0x53 PF: > { %s16_s14 = sadd.s32 1, %s523_s14   ;;  %s718_s9 = smov %s507_s10 }
  0x54   : > { %p13_p7 = scmp.ge.s32.totalorder %s16_s14, 4   ;;  %s719_s10 = smov %s511_s11 }
  0x55   : > { %s720_s11 = smov %s594_s21  ;;  %s721_s12 = smov %s519_s13 }
  0x56   : > { %s722_s13 = smov %s724_s16  ;;  %15 = sbr.rel (!%p13_p7) target bundleno = 4 (0x4), region = 87 }
  0x5d   :  { %286 = vsyncpa [#allocation3], 1 }
  0x5e   :  { %288 = vsyncpa [#allocation3 + $0x1], 1 }

// kernel: spatial_attention.3
= control target key start
LH: loop header
LB: loop body
LE: loop exit
PB: predicated region body
PF: predicated region fallthrough
CT: control target
= control target key end

     0   :  { %s2342_s0 = inlined_call_operand.vmem [shape: f32[98], index: 0, kind: input, shape index: {}]   ;;  %s2343_s1 = inlined_call_operand.vmem [shape: f32[2,16,32], index: 1, kind: input, shape index: {}]   ;;  %s2344_s2 = inlined_call_operand.vmem [shape: f32[16,32], index: 2, kind: output, shape index: {}]  }
   0x1   :  { %2464 = sst [smem:[#allocation38_spill]] %s2343_s1 }
   0x2   :  { %2465 = sst [smem:[#allocation39_spill]] %s2344_s2 }
   0x3   :  { %7 = vsyncpa [#allocation3], 0  ;;  %s14_s11 = sshll.u32 %s2342_s0, 4  ;;  %s15_s11 = int_to_ptr.vmem [resolvable:$true] %s14_s11 }
   0x4   :  { %s1056_s12 = scalar_lea.vmem %s15_s11, 16  ;;  %p1061_p1 = scmp.lt.s32.totalorder %s15_s11, %s15_s11 }
   0x5   :  { %p1057_p0 = scmp.ne.s32.totalorder %s15_s11, %s1056_s12  ;;  %p1062_p2 = scmp.lt.s32.totalorder %s1056_s12, %s1056_s12 }
   0x7   :  { %p1063_p3 = por %p1062_p2, %p1061_p1 }
   0x9   :  { %p1064_p4 = pnand %p1063_p3, %p1057_p0 }
   0xb   :  { %1067 = shalt.err (!%p1064_p4)
}
   0xc   :  { %s1070_s13 = smov [#allocation2]  }
   0xd   :  { %17 = dma.vmem_to_smem %s15_s11, 16, %s1070_s13, [#allocation3]  }
   0xe   :  { %1068 = dma.done.wait [#allocation3], 16  }
   0xf   :  { %1069 = vsyncadd [#allocation3], 4294967280 }
  0x10   :  { %23 = sfence }
  0x11   :  { %v2345_v0 = vlaneseq  ;;  %v1099_v1 = vld [vmem:[%s2343_s1] sm:$0xff]  ;;  %v1104_v2 = vld [vmem:[%s2343_s1 + $0x8] sm:$0xff]  ;;  %s1106_s17 = sld [smem:[#allocation2 + $0x1]]  ;;  %s1108_s18 = sld [smem:[#allocation2 + $0x8]]  ;;  %v1206_v34 = vld [vmem:[%s2343_s1 + $0x10] sm:$0xff]  ;;  %vm770_vm12 = vcmask 1047808  }
  0x12   :  { %v115_v3 = vrot.slane %v1099_v1, 5  ;;  %v116_v4 = vrot.slane %v1104_v2, 5  ;;  %v150_v5 = vrot.slane %v1099_v1, 6  ;;  %v151_v6 = vrot.slane %v1104_v2, 6  ;;  %s1114_s19 = sld [smem:[#allocation2 + $0xf]]  ;;  %s1121_s20 = sld [smem:[#allocation2 + $0x16]] }
  0x13   :  { %v1117_v7 = vshrl.u32 %v2345_v0, 7  ;;  %v199_v8 = vrot.slane %v1099_v1, 7  ;;  %v200_v9 = vrot.slane %v1104_v2, 7  ;;  %v290_v10 = vrot.slane %v1099_v1, 1  ;;  %s1125_s21 = sld [smem:[#allocation2 + $0x1d]]  ;;  %s1132_s22 = sld [smem:[#allocation2 + $0x24]] }
  0x14   :  { %v291_v11 = vrot.slane %v1104_v2, 1  ;;  %v339_v12 = vrot.slane %v1099_v1, 2  ;;  %v340_v17 = vrot.slane %v1104_v2, 2  ;;  %s1159_s23 = sld [smem:[#allocation2 + $0x2b]]  ;;  %s1167_s24 = sld [smem:[#allocation2 + $0x32]]  ;;  %v388_v26 = vrot.slane %v1099_v1, 3 }
  0x15   :  { %v26_v13 = vadd.s32 8, %v1117_v7  ;;  %vm117_vm0 = vcmp.lt.s32.totalorder %v1117_v7, 3  ;;  %vm152_vm1 = vcmp.lt.s32.totalorder %v1117_v7, 2  ;;  %vm201_vm2 = vcmp.lt.s32.totalorder %v1117_v7, 1  ;;  %s1182_s25 = sld [smem:[#allocation2 + $0x39]]  ;;  %v1211_v35 = vld [vmem:[%s2343_s1 + $0x18] sm:$0xff] }
  0x16   :  { %v1140_v14 = vsel %vm117_vm0, %v115_v3, %v116_v4  ;;  %v1148_v15 = vsel %vm152_vm1, %v150_v5, %v151_v6  ;;  %v1156_v16 = vsel %vm201_vm2, %v199_v8, %v200_v9  ;;  %vm292_vm3 = vcmp.lt.s32.totalorder %v1117_v7, 7  ;;  %s1224_s30 = sld [smem:[#allocation2 + $0x40]]  ;;  %s1232_s3 = sld [smem:[#allocation2 + $0x47]] }
  0x17   :  { %v1161_v18 = vadd.s32 1, %v26_v13  ;;  %v1163_v19 = vadd.s32 2, %v26_v13  ;;  %v2405_v20 = vstv %s1106_s17  ;;  %v1169_v21 = vadd.s32 3, %v26_v13  ;;  %s1237_s4 = sld [smem:[#allocation2 + $0x4e]]  ;;  %s1249_s5 = sld [smem:[#allocation2 + $0x55]] }
  0x18   :  { %2466 = sst [smem:[#allocation5_spill]] %s1121_s20  ;;  %v129_v22 = vmul.f32 %v2405_v20, %v1140_v14  ;;  %v2384_v23 = vstv %s1108_s18  ;;  %v2383_v24 = vstv %s1114_s19  ;;  %v2359_v28 = vstv %s1121_s20  ;;  %s1271_s7 = sld [smem:[#allocation2 + $0x5c]] }
  0x19   :  { %2467 = sst [smem:[#allocation6_spill]] %s1125_s21  ;;  %vm70_vm4 = vcmp.lt.s32.totalorder %v1161_v18, 16  ;;  %vm78_vm5 = vcmp.lt.s32.totalorder %v1163_v19, 16  ;;  %v166_v25 = vmul.f32 %v2384_v23, %v1148_v15  ;;  %v215_v27 = vmul.f32 %v2383_v24, %v1156_v16  ;;  %s1265_s6 = sld [smem:[#allocation2]] }
  0x1a   :  { %2468 = sst [smem:[#allocation7_spill]] %s1132_s22  ;;  %v294_v29 = vsel %vm292_vm3, %v291_v11, %v290_v10  ;;  %v2358_v30 = vstv %s1125_s21  ;;  %v257_v32 = vmul.f32 %v2359_v28, %v1104_v2  ;;  %vm341_vm6 = vcmp.lt.s32.totalorder %v1117_v7, 6  ;;  %s1273_s8 = sld [smem:[#allocation2 + $0x7]] }
  0x1b   :  { %2469 = sst [smem:[#allocation8_spill]] %s1159_s23  ;;  %v168_v31 = vadd.f32 %v166_v25, %v129_v22  ;;  %v1200_v33 = vsel %vm70_vm4, %v294_v29, 0.0  ;;  %vm86_vm7 = vcmp.lt.s32.totalorder %v1169_v21, 16  ;;  %v343_v37 = vsel %vm341_vm6, %v340_v17, %v339_v12  ;;  %s1285_s9 = sld [smem:[#allocation2 + $0xe]] }
  0x1c   :  { %2470 = sst [smem:[#allocation9_spill]] %s1167_s24  ;;  %v306_v36 = vmul.f32 %v2358_v30, %v1200_v33  ;;  %v2357_v38 = vstv %s1132_s22  ;;  %v1228_v40 = vsel %vm78_vm5, %v343_v37, 0.0  ;;  %v389_v41 = vrot.slane %v1104_v2, 3  ;;  %s1287_s10 = sld [smem:[#allocation2 + $0x15]] }
  0x1d   :  { %2471 = sst [smem:[#allocation10_spill]] %s1182_s25  ;;  %v217_v39 = vadd.f32 %v215_v27, %v168_v31  ;;  %vm390_vm8 = vcmp.lt.s32.totalorder %v1117_v7, 5  ;;  %v2352_v42 = vstv %s1159_s23  ;;  %v440_v43 = vrot.slane %v1206_v34, 5  ;;  %s1306_s11 = sld [smem:[#allocation2 + $0x1c]] }
  0x1e   :  { %2472 = sst [smem:[#allocation11_spill]] %s1224_s30  ;;  %v441_v44 = vrot.slane %v1211_v35, 5  ;;  %v355_v46 = vmul.f32 %v2357_v38, %v1228_v40  ;;  %v392_v47 = vsel %vm390_vm8, %v389_v41, %v388_v26  ;;  %v2349_v48 = vstv %s1167_s24  ;;  %s1308_s12 = sld [smem:[#allocation2 + $0x23]] }
  0x1f   :  { %2473 = sst [smem:[#allocation12_spill]] %s1232_s3  ;;  %v259_v45 = vadd.f32 %v257_v32, %v217_v39  ;;  %v1253_v49 = vsel %vm86_vm7, %v392_v47, 0.0  ;;  %v488_v51 = vrot.slane %v1206_v34, 6  ;;  %v489_v52 = vrot.slane %v1211_v35, 6  ;;  %s1313_s13 = sld [smem:[#allocation2 + $0x2a]] }
  0x20   :  { %2474 = sst [smem:[#allocation13_spill]] %s1237_s4  ;;  %v1261_v50 = vsel %vm117_vm0, %v440_v43, %v441_v44  ;;  %v404_v54 = vmul.f32 %v2352_v42, %v1253_v49  ;;  %v2348_v55 = vstv %s1182_s25  ;;  %v2417_v57 = vrot.slane %v1206_v34, 7  ;;  %s1315_s14 = sld [smem:[#allocation2 + $0x31]] }
  0x21   :  { %2475 = sst [smem:[#allocation14_spill]] %s1249_s5  ;;  %v308_v53 = vadd.f32 %v306_v36, %v259_v45  ;;  %v1281_v56 = vsel %vm152_vm1, %v488_v51, %v489_v52  ;;  %v2416_v58 = vrot.slane %v1211_v35, 7  ;;  %v455_v60 = vmul.f32 %v2349_v48, %v1261_v50  ;;  %s1326_s15 = sld [smem:[#allocation2 + $0x38]] }
  0x22   :  { %2476 = sst [smem:[#allocation15_spill]] %s1271_s7  ;;  %v2381_v61 = vrot.slane %v1206_v34, 1  ;;  %v503_v62 = vmul.f32 %v2348_v55, %v1281_v56  ;;  %v2347_v13 = vstv %s1224_s30  ;;  %v2382_v22 = vrot.slane %v1211_v35, 1  ;;  %s1350_s0 = sld [smem:[#allocation2 + $0x3f]] }
  0x23   :  { %v357_v59 = vadd.f32 %v355_v46, %v308_v53  ;;  %v1302_v63 = vsel %vm201_vm2, %v2417_v57, %v2416_v58  ;;  %v2346_v27 = vstv %s1232_s3  ;;  %v2369_v29 = vrot.slane %v1206_v34, 2  ;;  %s1362_s16 = sld [smem:[#allocation2 + $0x46]]  ;;  %s1364_s26 = sld [smem:[#allocation2 + $0x4d]] }
  0x24   :  { %v2375_v31 = vrot.slane %v1211_v35, 2  ;;  %v629_v32 = vsel %vm292_vm3, %v2382_v22, %v2381_v61  ;;  %v2350_v36 = vstv %s1237_s4  ;;  %v2367_v37 = vrot.slane %v1206_v34, 3  ;;  %s1372_s27 = sld [smem:[#allocation2 + $0x2]]  ;;  %s1374_s28 = sld [smem:[#allocation2 + $0x9]] }
  0x25   :  { %v406_v25 = vadd.f32 %v404_v54, %v357_v59  ;;  %v2368_v39 = vrot.slane %v1211_v35, 3  ;;  %v551_v46 = vmul.f32 %v2347_v13, %v1302_v63  ;;  %v1333_v47 = vsel %vm70_vm4, %v629_v32, 0.0  ;;  %s1385_s29 = sld [smem:[#allocation2 + $0x54]]  ;;  %s1387_s2 = sld [smem:[#allocation2 + $0x10]] }
  0x26   :  { %v677_v53 = vsel %vm341_vm6, %v2375_v31, %v2369_v29  ;;  %v593_v54 = vmul.f32 %v1211_v35, %v2346_v27  ;;  %v123_v18 = vstv %s1265_s6  ;;  %v2366_v0 = vstv %s1271_s7  ;;  %s1398_s1 = sld [smem:[#allocation2 + $0x17]]  ;;  %s1421_s4 = sld [smem:[#allocation2 + $0x5b]] }
  0x27   :  { %2477 = sst [smem:[#allocation16_spill]] %s1326_s15  ;;  %v457_v45 = vadd.f32 %v455_v60, %v406_v25  ;;  %v1346_v59 = vsel %vm78_vm5, %v677_v53, 0.0  ;;  %v2353_v60 = vstv %s1249_s5  ;;  %v725_v32 = vsel %vm390_vm8, %v2368_v39, %v2367_v37  ;;  %s1400_s5 = sld [smem:[#allocation2 + $0x1e]] }
  0x28   :  { %2478 = sst [smem:[#allocation17_spill]] %s1350_s0  ;;  %v125_v19 = vmul.f32 %v123_v18, %v1140_v14  ;;  %v207_v53 = vstv %s1285_s9  ;;  %v249_v27 = vstv %s1287_s10  ;;  %v689_v55 = vmul.f32 %v2353_v60, %v1346_v59  ;;  %s1423_s3 = sld [smem:[#allocation2 + $0x25]] }
  0x29   :  { %v505_v25 = vadd.f32 %v503_v62, %v457_v45  ;;  %v641_v62 = vmul.f32 %v2350_v36, %v1333_v47  ;;  %v158_v45 = vstv %s1273_s8  ;;  %v209_v36 = vmul.f32 %v207_v53, %v1156_v16  ;;  %s1431_s30 = sld [smem:[#allocation2 + $0x2c]]  ;;  %s1433_s25 = sld [smem:[#allocation2 + $0x33]] }
  0x2a   :  { %2479 = sst [smem:[#allocation18_spill]] %s1372_s27  ;;  %v160_v48 = vmul.f32 %v158_v45, %v1148_v15  ;;  %v1391_v42 = vsel %vm86_vm7, %v725_v32, 0.0  ;;  %v2414_v60 = vstv %s1308_s12  ;;  %v2407_v28 = vstv %s1313_s13  ;;  %s1452_s7 = sld [smem:[#allocation2 + $0x3a]] }
  0x2b   :  { %2480 = sst [smem:[#allocation19_spill]] %s1374_s28  ;;  %v553_v13 = vadd.f32 %v551_v46, %v505_v25  ;;  %v251_v46 = vmul.f32 %v249_v27, %v1104_v2  ;;  %v2418_v25 = vstv %s1306_s11  ;;  %v2406_v21 = vstv %s1315_s14  ;;  %s1458_s24 = sld [smem:[#allocation2 + $0x41]] }
  0x2c   :  { %2481 = sst [smem:[#allocation20_spill]] %s1385_s29  ;;  %v162_v30 = vadd.f32 %v160_v48, %v125_v19  ;;  %v1410_v32 = vsel %vm292_vm3, %v290_v10, %v291_v11  ;;  %v2374_v48 = vstv %s1326_s15  ;;  %v737_v10 = vmul.f32 %v2366_v0, %v1391_v42  ;;  %s1464_s23 = sld [smem:[#allocation2 + $0x48]] }
  0x2d   :  { %2482 = sst [smem:[#allocation21_spill]] %s1387_s2  ;;  %v595_v38 = vadd.f32 %v593_v54, %v553_v13  ;;  %v1418_v13 = vsel %vm341_vm6, %v339_v12, %v340_v17  ;;  %v300_v19 = vmul.f32 %v2418_v25, %v1200_v33  ;;  %v1441_v12 = vsel %vm390_vm8, %v388_v26, %v389_v41  ;;  %s1466_s22 = sld [smem:[#allocation2 + $0x4f]] }
  0x2e   :  { %2483 = sst [smem:[#allocation22_spill]] %s1398_s1  ;;  %v211_v11 = vadd.f32 %v209_v36, %v162_v30  ;;  %v349_v17 = vmul.f32 %v2414_v60, %v1228_v40  ;;  %v398_v30 = vmul.f32 %v2407_v28, %v1253_v49  ;;  %v497_v26 = vmul.f32 %v2374_v48, %v1281_v56  ;;  %s1476_s21 = sld [smem:[#allocation2 + $0x4]] }
  0x2f   :  { %2484 = sst [smem:[#allocation23_spill]] %s1400_s5  ;;  %v643_v54 = vadd.f32 %v641_v62, %v595_v38  ;;  %v449_v38 = vmul.f32 %v2406_v21, %v1261_v50  ;;  %v2397_v41 = vstv %s1350_s0  ;;  %v2404_v0 = vstv %s1362_s16  ;;  %s1478_s15 = sld [smem:[#allocation2 + $0xb]] }
  0x30   :  { %2485 = sst [smem:[#allocation24_spill]] %s1421_s4  ;;  %v253_v62 = vadd.f32 %v251_v46, %v211_v11  ;;  %v2394_v37 = vstv %s1364_s26  ;;  %v2380_v39 = vstv %s1372_s27  ;;  %v2379_v29 = vstv %s1374_s28  ;;  %s1484_s20 = sld [smem:[#allocation2 + $0x12]] }
  0x31   :  { %2486 = sst [smem:[#allocation25_spill]] %s1431_s30  ;;  %v691_v36 = vadd.f32 %v689_v55, %v643_v54  ;;  %v133_v54 = vmul.f32 %v2380_v39, %v1140_v14  ;;  %v172_v11 = vmul.f32 %v2379_v29, %v1148_v15  ;;  %v2396_v48 = vstv %s1385_s29  ;;  %s1486_s27 = sld [smem:[#allocation2 + $0x19]] }
  0x32   :  { %2487 = sst [smem:[#allocation26_spill]] %s1452_s7  ;;  %v302_v46 = vadd.f32 %v300_v19, %v253_v62  ;;  %v2389_v31 = vstv %s1400_s5  ;;  %s2385_s28 = smov 32   ;;  %v545_v61 = vmul.f32 %v2397_v41, %v1302_v63  ;;  %v2400_v22 = vstv %s1421_s4 }
  0x33   :  { %v1468_v55 = vadd.f32 %v737_v10, %v691_v36  ;;  %v2393_v10 = vstv %s1387_s2  ;;  %v2390_v36 = vstv %s1398_s1  ;;  %v174_v62 = vadd.f32 %v172_v11, %v133_v54  ;;  %s1508_s1 = sld [smem:[#allocation2 + $0x56]]  ;;  %s1510_s2 = sld [smem:[#allocation2 + $0x27]] }
  0x34   :  { %v351_v19 = vadd.f32 %v349_v17, %v302_v46  ;;  %v221_v29 = vmul.f32 %v2393_v10, %v1156_v16  ;;  %v263_v39 = vmul.f32 %v2390_v36, %v1104_v2  ;;  %v312_v24 = vmul.f32 %v2389_v31, %v1200_v33  ;;  %s1522_s5 = sld [smem:[#allocation2 + $0x5d]]  ;;  %s1524_s0 = sld [smem:[#allocation2 + $0x2e]] }
  0x35   :  { %798 = vrot.lane.b32.xlu1 %v1468_v55, %s2385_s28  ;;  %v2399_v23 = vstv %s1423_s3  ;;  %s1504_s28 = sld [smem:[#allocation2 + $0x20]]  ;;  %v2402_v54 = vstv %s1431_s30  ;;  %v2403_v11 = vstv %s1433_s25  ;;  %v587_v31 = vmul.f32 %v1211_v35, %v2404_v0  ;;  %s1532_s29 = sld [smem:[#allocation2 + $0x35]] }
  0x36   :  { %v400_v17 = vadd.f32 %v398_v30, %v351_v19  ;;  %v223_v46 = vadd.f32 %v221_v29, %v174_v62  ;;  %v635_v36 = vmul.f32 %v2394_v37, %v1333_v47  ;;  %v683_v30 = vmul.f32 %v2396_v48, %v1346_v59  ;;  %s1542_s4 = sld [smem:[#allocation2 + $0x3c]]  ;;  %s1548_s30 = sld [smem:[#allocation2 + $0x43]] }
  0x37   :  { %2488 = sst [smem:[#allocation27_spill]] %s1486_s27  ;;  %v2408_v29 = vstv %s1452_s7  ;;  %v731_v62 = vmul.f32 %v2400_v22, %v1391_v42  ;;  %v361_v37 = vmul.f32 %v2399_v23, %v1228_v40  ;;  %v410_v48 = vmul.f32 %v2402_v54, %v1253_v49  ;;  %s1570_s7 = sld [smem:[#allocation2 + $0x4a]] }
  0x38   :  { %v451_v19 = vadd.f32 %v449_v38, %v400_v17  ;;  %v265_v10 = vadd.f32 %v263_v39, %v223_v46  ;;  %v461_v41 = vmul.f32 %v2403_v11, %v1261_v50  ;;  %v2412_v38 = vstv %s1458_s24  ;;  %s1699_s6 = sld [smem:[#allocation2 + $0x5]]  ;;  %s1713_s8 = sld [smem:[#allocation2 + $0xc]] }
  0x39   :  { %2490 = sst [smem:[#allocation29_spill]] %s1510_s2  ;;  %v597_v17 = vstv %s1464_s23  ;;  %v509_v23 = vmul.f32 %v2408_v29, %v1281_v56  ;;  %v645_v22 = vstv %s1466_s22  ;;  %v2411_v54 = vstv %s1476_s21  ;;  %s1715_s9 = sld [smem:[#allocation2 + $0x13]] }
  0x3a   :  { %2491 = sst [smem:[#allocation30_spill]] %s1524_s0  ;;  %v499_v39 = vadd.f32 %v497_v26, %v451_v19  ;;  %v314_v46 = vadd.f32 %v312_v24, %v265_v10  ;;  %v2410_v11 = vstv %s1478_s15  ;;  %v2413_v0 = vstv %s1484_s20  ;;  %s2506_s10 = sld [smem:[#allocation5_spill]] }
  0x3b   :  { %2489 = sst [smem:[#allocation28_spill]] %s1504_s28  ;;  %v2415_v20 = vstv %s1486_s27  ;;  %v141_v24 = vmul.f32 %v2411_v54, %v1140_v14  ;;  %v184_v26 = vmul.f32 %v2410_v11, %v1148_v15  ;;  %v557_v10 = vmul.f32 %v2412_v38, %v1302_v63  ;;  %s2570_s23 = sld [smem:[#allocation27_spill]] }
  0x3c   :  { %2492 = sst [smem:[#allocation31_spill]] %s1532_s29  ;;  %v547_v21 = vadd.f32 %v545_v61, %v499_v39  ;;  %v363_v28 = vadd.f32 %v361_v37, %v314_v46  ;;  %v233_v19 = vmul.f32 %v2413_v0, %v1156_v16  ;;  %v275_v29 = vmul.f32 %v2415_v20, %v1104_v2  ;;  %s1607_s27 = sld [smem:[#allocation2 + $0x5f]] }
  0x3d   :  { %2493 = sst [smem:[#allocation32_spill]] %s1542_s4  ;;  %v2455_v61 = vstv %s1504_s28  ;;  %v186_v46 = vadd.f32 %v184_v26, %v141_v24  ;;  %v2436_v11 = vstv %s1510_s2  ;;  %v693_v54 = vstv %s1508_s1  ;;  %s1590_s28 = sld [smem:[#allocation2 + $0x51]] }
  0x3e   :  { %2494 = sst [smem:[#allocation33_spill]] %s1548_s30  ;;  %v589_v37 = vadd.f32 %v587_v31, %v547_v21  ;;  %v412_v39 = vadd.f32 %v410_v48, %v363_v28  ;;  %v741_v38 = vstv %s1522_s5  ;;  %v324_v0 = vmul.f32 %v2455_v61, %v1200_v33  ;;  %s1605_s2 = sld [smem:[#allocation2 + $0x58]] }
  0x3f   :  { %2495 = sst [smem:[#allocation34_spill]] %s1570_s7  ;;  %v2422_v60 = vstv %s1524_s0  ;;  %v235_v57 = vadd.f32 %v233_v19, %v186_v46  ;;  %v2423_v25 = vstv %s1532_s29  ;;  %v599_v28 = vmul.f32 %v1211_v35, %v597_v17  ;;  %s2499_s29 = smov 32  }
  0x40   :  { %v637_v20 = vadd.f32 %v635_v36, %v589_v37  ;;  %v463_v58 = vadd.f32 %v461_v41, %v412_v39  ;;  %v647_v31 = vmul.f32 %v645_v22, %v1333_v47  ;;  %v373_v21 = vmul.f32 %v2436_v11, %v1228_v40  ;;  %s1893_s0 = sld [smem:[#allocation2 + $0x22]]  ;;  %s2575_s1 = sld [smem:[#allocation29_spill]] }
  0x41   :  { %v2435_v48 = vstv %s1542_s4  ;;  %v277_v41 = vadd.f32 %v275_v29, %v235_v57  ;;  %v2433_v26 = vstv %s1548_s30  ;;  %v695_v19 = vmul.f32 %v693_v54, %v1346_v59  ;;  %s2543_s30 = sld [smem:[#allocation14_spill]]  ;;  %s2546_s4 = sld [smem:[#allocation15_spill]] }
  0x42   :  { %v685_v36 = vadd.f32 %v683_v30, %v637_v20  ;;  %v511_v24 = vadd.f32 %v509_v23, %v463_v58  ;;  %v743_v37 = vmul.f32 %v741_v38, %v1391_v42  ;;  %v422_v39 = vmul.f32 %v2422_v60, %v1253_v49  ;;  %2498 = sst [smem:[#allocation37_spill]] %s1607_s27  ;;  %s2582_s5 = sld [smem:[#allocation31_spill]] }
  0x43   :  { %2496 = sst [smem:[#allocation35_spill]] %s1590_s28  ;;  %v473_v46 = vmul.f32 %v2423_v25, %v1261_v50  ;;  %v326_v57 = vadd.f32 %v324_v0, %v277_v41  ;;  %v521_v58 = vmul.f32 %v2435_v48, %v1281_v56  ;;  %v569_v30 = vmul.f32 %v2433_v26, %v1302_v63 }
  0x44   :  { %2497 = sst [smem:[#allocation36_spill]] %s1605_s2  ;;  %v1609_v20 = vadd.f32 %v731_v62, %v685_v36  ;;  %v559_v23 = vadd.f32 %v557_v10, %v511_v24  ;;  %v2432_v29 = vstv %s1570_s7  ;;  %v41_v60 = vadd.s32 4294967293, %v1117_v7  ;;  %s2541_s7 = sld [smem:[#allocation13_spill]] }
  0x45   :  { %v49_v25 = vadd.s32 4294967294, %v1117_v7  ;;  %v375_v36 = vadd.f32 %v373_v21, %v326_v57  ;;  %v57_v0 = vadd.s32 4294967295, %v1117_v7  ;;  %v119_v10 = vsel %vm117_vm0, %v116_v4, %v115_v3 }
  0x46   :  { %774 = vrot.lane.b32.xlu0 %v1609_v20, %s2499_s29  ;;  %v601_v62 = vadd.f32 %v599_v28, %v559_v23  ;;  %vm43_vm9 = vcmp.ge.s32.totalorder %v41_v60, 0  ;;  %v154_v28 = vsel %vm152_vm1, %v151_v6, %v150_v5  ;;  %v203_v3 = vsel %vm201_vm2, %v200_v9, %v199_v8 }
  0x47   :  { %vm51_vm10 = vcmp.ge.s32.totalorder %v49_v25, 0  ;;  %v424_v21 = vadd.f32 %v422_v39, %v375_v36  ;;  %vm59_vm11 = vcmp.ge.s32.totalorder %v57_v0, 0  ;;  %v1642_v24 = vsel %vm43_vm9, %v119_v10, 0.0 }
  0x48   :  { %v649_v4 = vadd.f32 %v647_v31, %v601_v62  ;;  %v2431_v41 = vstv %s1590_s28  ;;  %v124_v5 = vmul.f32 %v123_v18, %v1642_v24  ;;  %v1649_v6 = vsel %vm51_vm10, %v154_v28, 0.0  ;;  %s1823_s28 = sld [smem:[#allocation2 + $0x4b]] }
  0x49   :  { %v1652_v23 = vsel %vm59_vm11, %v203_v3, 0.0  ;;  %v475_v8 = vadd.f32 %v473_v46, %v424_v21  ;;  %v159_v9 = vmul.f32 %v158_v45, %v1649_v6  ;;  %v611_v39 = vmul.f32 %v1211_v35, %v2432_v29 }
  0x4a   :  { %v697_v57 = vadd.f32 %v695_v19, %v649_v4  ;;  %v208_v31 = vmul.f32 %v207_v53, %v1652_v23  ;;  %v2428_v62 = vstv %s1605_s2  ;;  %v2427_v18 = vstv %s1607_s27  ;;  %s2513_s27 = sld [smem:[#allocation20_spill]]  ;;  %s1769_s2 = sld [smem:[#allocation2 + $0x28]] }
  0x4b   :  { %v443_v19 = vsel %vm117_vm0, %v441_v44, %v440_v43  ;;  %v523_v46 = vadd.f32 %v521_v58, %v475_v8  ;;  %v161_v53 = vadd.f32 %v159_v9, %v124_v5  ;;  %v250_v36 = vmul.f32 %v249_v27, %v1099_v1 }
  0x4c   :  { %v1671_v45 = vadd.f32 %v743_v37, %v697_v57  ;;  %v659_v10 = vmul.f32 %v2431_v41, %v1333_v47  ;;  %v1680_v28 = vsel %vm43_vm9, %v443_v19, 0.0  ;;  %v491_v43 = vsel %vm152_vm1, %v489_v52, %v488_v51 }
  0x4d   :  { %v571_v44 = vadd.f32 %v569_v30, %v523_v46  ;;  %v210_v27 = vadd.f32 %v208_v31, %v161_v53  ;;  %v2500_v37 = vstv %s1306_s11  ;;  %v2501_v58 = vrot.slane %v1206_v34, 7  ;;  %s2509_s11 = sld [smem:[#allocation16_spill]] }
  0x4e   :  { %822 = vrot.lane.b32.xlu1 %v1671_v45, %s2499_s29  ;;  %v299_v60 = vmul.f32 %v2500_v37, %v1410_v32  ;;  %v2502_v3 = vrot.slane %v1211_v35, 7  ;;  %v707_v51 = vmul.f32 %v2428_v62, %v1346_v59  ;;  %v755_v52 = vmul.f32 %v2427_v18, %v1391_v42 }
  0x4f   :  { %v2503_v30 = vstv %s1308_s12  ;;  %v2504_v5 = vstv %s1313_s13  ;;  %v613_v8 = vadd.f32 %v611_v39, %v571_v44  ;;  %v252_v9 = vadd.f32 %v250_v36, %v210_v27  ;;  %s2511_s12 = sld [smem:[#allocation17_spill]]  ;;  %s1735_s13 = sld [smem:[#allocation2 + $0x1a]] }
  0x50   :  { %v539_v4 = vsel %vm201_vm2, %v2502_v3, %v2501_v58  ;;  %v348_v21 = vmul.f32 %v2503_v30, %v1418_v13  ;;  %v397_v57 = vmul.f32 %v2504_v5, %v1441_v12  ;;  %v2505_v31 = vstv %s1315_s14  ;;  %s1737_s14 = sld [smem:[#allocation2 + $0x21]]  ;;  %2525 = sst [smem:[#allocation16_spill]] %s1769_s2 }
  0x51   :  { %v448_v19 = vmul.f32 %v2505_v31, %v1680_v28  ;;  %v1721_v46 = vsel %vm51_vm10, %v491_v43, 0.0  ;;  %v1724_v53 = vsel %vm59_vm11, %v539_v4, 0.0  ;;  %v2507_v37 = vstv %s1106_s17  ;;  %s2516_s17 = sld [smem:[#allocation6_spill]] }
  0x52   :  { %v128_v58 = vmul.f32 %v2507_v37, %v1642_v24  ;;  %v2508_v3 = vstv %s1108_s18  ;;  %v2510_v39 = vstv %s1114_s19  ;;  %v661_v25 = vadd.f32 %v659_v10, %v613_v8  ;;  %s2522_s18 = sld [smem:[#allocation24_spill]]  ;;  %s2524_s19 = sld [smem:[#allocation7_spill]] }
  0x53   :  { %v165_v30 = vmul.f32 %v2508_v3, %v1649_v6  ;;  %v214_v36 = vmul.f32 %v2510_v39, %v1652_v23  ;;  %v301_v0 = vadd.f32 %v299_v60, %v252_v9  ;;  %v2514_v43 = vrot.slane %v1211_v35, 1 }
  0x54   :  { %v2515_v44 = vrot.slane %v1206_v34, 1  ;;  %v2517_v4 = vrot.slane %v1211_v35, 2  ;;  %v2518_v5 = vrot.slane %v1206_v34, 2  ;;  %v2519_v37 = vstv %s1362_s16  ;;  %s1777_s16 = sld [smem:[#allocation2 + $0x2f]] }
  0x55   :  { %v586_v10 = vmul.f32 %v1206_v34, %v2519_v37  ;;  %v2520_v60 = vrot.slane %v1211_v35, 3  ;;  %v2521_v8 = vrot.slane %v1206_v34, 3  ;;  %v167_v3 = vadd.f32 %v165_v30, %v128_v58 }
  0x56   :  { %2512 = sst [smem:[#allocation5_spill]] %s1737_s14  ;;  %v1745_v27 = vsel %vm292_vm3, %v2515_v44, %v2514_v43  ;;  %v1753_v31 = vsel %vm341_vm6, %v2518_v5, %v2517_v4  ;;  %v2523_v39 = vstv %s2506_s10  ;;  %v709_v44 = vadd.f32 %v707_v51, %v661_v25  ;;  %s1788_s10 = sld [smem:[#allocation2 + $0x36]] }
  0x57   :  { %v1764_v9 = vsel %vm390_vm8, %v2521_v8, %v2520_v60  ;;  %v256_v43 = vmul.f32 %v2523_v39, %v1099_v1  ;;  %v350_v4 = vadd.f32 %v348_v21, %v301_v0  ;;  %v2526_v5 = vstv %s2509_s11  ;;  %s2533_s11 = sld [smem:[#allocation8_spill]]  ;;  %s2581_s22 = sld [smem:[#allocation5_spill]] }
  0x58   :  { %v496_v37 = vmul.f32 %v2526_v5, %v1721_v46  ;;  %v2527_v7 = vstv %s2511_s12  ;;  %v2529_v58 = vstv %s1364_s26  ;;  %v2530_v8 = vstv %s2513_s27  ;;  %s2536_s26 = sld [smem:[#allocation9_spill]]  ;;  %s1803_s27 = sld [smem:[#allocation2 + $0x3d]] }
  0x59   :  { %v544_v60 = vmul.f32 %v2527_v7, %v1724_v53  ;;  %v634_v30 = vmul.f32 %v2529_v58, %v1745_v27  ;;  %v682_v39 = vmul.f32 %v2530_v8, %v1753_v31  ;;  %v216_v51 = vadd.f32 %v214_v36, %v167_v3  ;;  %s2537_s12 = sld [smem:[#allocation10_spill]] }
  0x5a   :  { %2528 = sst [smem:[#allocation17_spill]] %s1777_s16  ;;  %v2531_v21 = vstv %s2516_s17  ;;  %v1790_v0 = vadd.f32 %v755_v52, %v709_v44  ;;  %v399_v5 = vadd.f32 %v397_v57, %v350_v4  ;;  %v2534_v7 = vstv %s2522_s18  ;;  %s2538_s17 = sld [smem:[#allocation11_spill]] }
  0x5b   :  { %v305_v25 = vmul.f32 %v2531_v21, %v1410_v32  ;;  %v1795_v58 = vmul.f32 %v2534_v7, %v1764_v9  ;;  %v2535_v18 = vstv %s2524_s19  ;;  %v258_v36 = vadd.f32 %v256_v43, %v216_v51  ;;  %s1816_s18 = sld [smem:[#allocation2 + $0x44]]  ;;  %s2540_s19 = sld [smem:[#allocation12_spill]] }
  0x5c   :  { %2532 = sst [smem:[#allocation20_spill]] %s1788_s10  ;;  %v354_v8 = vmul.f32 %v2535_v18, %v1418_v13  ;;  %v2448_v3 = vstv %s1699_s6  ;;  %v2438_v62 = vstv %s1713_s8  ;;  %v2437_v21 = vstv %s1715_s9  ;;  %846 = vrot.lane.b32.xlu1 %v1790_v0, %s2499_s29 }
  0x5d   :  { %v450_v52 = vadd.f32 %v448_v19, %v399_v5  ;;  %v145_v57 = vmul.f32 %v2448_v3, %v1140_v14  ;;  %v190_v18 = vmul.f32 %v2438_v62, %v1148_v15  ;;  %v239_v43 = vmul.f32 %v2437_v21, %v1156_v16 }
  0x5e   :  { %v307_v44 = vadd.f32 %v305_v25, %v258_v36  ;;  %v2539_v4 = vstv %s2533_s11  ;;  %v2440_v19 = vstv %s1735_s13  ;;  %v2446_v5 = vstv %s1737_s14  ;;  %s1838_s11 = sld [smem:[#allocation2 + $0x52]]  ;;  %s1874_s14 = sld [smem:[#allocation2 + $0xd]] }
  0x5f   :  { %v403_v51 = vmul.f32 %v2539_v4, %v1441_v12  ;;  %v498_v7 = vadd.f32 %v496_v37, %v450_v52  ;;  %v2542_v41 = vstv %s2536_s26  ;;  %v192_v26 = vadd.f32 %v190_v18, %v145_v57  ;;  %s1851_s26 = sld [smem:[#allocation2 + $0x59]] }
  0x60   :  { %v454_v29 = vmul.f32 %v2542_v41, %v1680_v28  ;;  %v281_v25 = vmul.f32 %v2440_v19, %v1104_v2  ;;  %v356_v36 = vadd.f32 %v354_v8, %v307_v44  ;;  %v2544_v4 = vstv %s2537_s12  ;;  %s2550_s12 = sld [smem:[#allocation18_spill]] }
  0x61   :  { %v502_v48 = vmul.f32 %v2544_v4, %v1721_v46  ;;  %v2545_v11 = vstv %s2538_s17  ;;  %v2441_v62 = vstv %s1769_s2  ;;  %v546_v37 = vadd.f32 %v544_v60, %v498_v7  ;;  %s2551_s17 = sld [smem:[#allocation19_spill]]  ;;  %s2555_s2 = sld [smem:[#allocation22_spill]] }
  0x62   :  { %v550_v21 = vmul.f32 %v2545_v11, %v1724_v53  ;;  %v241_v41 = vadd.f32 %v239_v43, %v192_v26  ;;  %v330_v52 = vmul.f32 %v2446_v5, %v1200_v33  ;;  %v2444_v57 = vstv %s1777_s16  ;;  %s1891_s16 = sld [smem:[#allocation2 + $0x1b]] }
  0x63   :  { %v405_v8 = vadd.f32 %v403_v51, %v356_v36  ;;  %v2547_v18 = vstv %s2540_s19  ;;  %v2548_v4 = vstv %s2541_s7  ;;  %v2445_v19 = vstv %s1788_s10  ;;  %s1859_s19 = sld [smem:[#allocation2 + $0x60]]  ;;  %s2559_s10 = sld [smem:[#allocation23_spill]] }
  0x64   :  { %v592_v44 = vmul.f32 %v1206_v34, %v2547_v18  ;;  %v640_v11 = vmul.f32 %v2548_v4, %v1745_v27  ;;  %v588_v60 = vadd.f32 %v586_v10, %v546_v37  ;;  %v2549_v26 = vstv %s2543_s30  ;;  %s2554_s7 = sld [smem:[#allocation21_spill]]  ;;  %s1868_s30 = sld [smem:[#allocation2 + $0x6]] }
  0x65   :  { %v688_v43 = vmul.f32 %v2549_v26, %v1753_v31  ;;  %v283_v7 = vadd.f32 %v281_v25, %v241_v41  ;;  %v379_v51 = vmul.f32 %v2441_v62, %v1228_v40  ;;  %v456_v36 = vadd.f32 %v454_v29, %v405_v8 }
  0x66   :  { %v2553_v18 = vstv %s2546_s4  ;;  %v428_v10 = vmul.f32 %v2444_v57, %v1253_v49  ;;  %v2454_v37 = vstv %s1803_s27  ;;  %v636_v25 = vadd.f32 %v634_v30, %v588_v60  ;;  %s1876_s4 = sld [smem:[#allocation2 + $0x14]] }
  0x67   :  { %v736_v4 = vmul.f32 %v2553_v18, %v1764_v9  ;;  %v332_v41 = vadd.f32 %v330_v52, %v283_v7  ;;  %v479_v26 = vmul.f32 %v2445_v19, %v1261_v50  ;;  %v2453_v62 = vstv %s1816_s18 }
  0x68   :  { %v504_v29 = vadd.f32 %v502_v48, %v456_v36  ;;  %v2451_v8 = vstv %s1823_s28  ;;  %v2556_v18 = vstv %s2550_s12  ;;  %v2557_v30 = vstv %s2551_s17  ;;  %s2561_s12 = sld [smem:[#allocation25_spill]]  ;;  %s1908_s17 = sld [smem:[#allocation2 + $0x29]] }
  0x69   :  { %2552 = sst [smem:[#allocation6_spill]] %s1859_s19  ;;  %v132_v57 = vmul.f32 %v2556_v18, %v1642_v24  ;;  %v171_v52 = vmul.f32 %v2557_v30, %v1649_v6  ;;  %v684_v60 = vadd.f32 %v682_v39, %v636_v25  ;;  %v381_v7 = vadd.f32 %v379_v51, %v332_v41 }
  0x6a   :  { %v527_v19 = vmul.f32 %v2454_v37, %v1281_v56  ;;  %v2558_v5 = vstv %s2554_s7  ;;  %v552_v48 = vadd.f32 %v550_v21, %v504_v29  ;;  %v2452_v36 = vstv %s1838_s11  ;;  %s1954_s7 = sld [smem:[#allocation2 + $0x45]] }
  0x6b   :  { %v220_v3 = vmul.f32 %v2558_v5, %v1652_v23  ;;  %v173_v18 = vadd.f32 %v171_v52, %v132_v57  ;;  %v2560_v39 = vstv %s2555_s2  ;;  %v1900_v25 = vadd.f32 %v1795_v58, %v684_v60  ;;  %s1923_s2 = sld [smem:[#allocation2 + $0x30]] }
  0x6c   :  { %v262_v51 = vmul.f32 %v2560_v39, %v1099_v1  ;;  %v430_v41 = vadd.f32 %v428_v10, %v381_v7  ;;  %v575_v5 = vmul.f32 %v2453_v62, %v1302_v63  ;;  %v617_v30 = vmul.f32 %v1211_v35, %v2451_v8 }
  0x6d   :  { %v594_v21 = vadd.f32 %v592_v44, %v552_v48  ;;  %v2458_v57 = vstv %s1851_s26  ;;  %v222_v29 = vadd.f32 %v220_v3, %v173_v18  ;;  %v2562_v58 = vstv %s2559_s10  ;;  %771 = vrot.lane.b32.xlu0 %v1900_v25, %s2499_s29  ;;  %s1947_s10 = sld [smem:[#allocation2 + $0x3e]] }
  0x6e   :  { %v311_v52 = vmul.f32 %v2562_v58, %v1410_v32  ;;  %v481_v10 = vadd.f32 %v479_v26, %v430_v41  ;;  %v665_v60 = vmul.f32 %v2452_v36, %v1333_v47  ;;  %v2457_v7 = vstv %s1859_s19  ;;  %s1983_s19 = sld [smem:[#allocation2 + $0x5a]] }
  0x6f   :  { %v2563_v39 = vstv %s1423_s3  ;;  %v642_v3 = vadd.f32 %v640_v11, %v594_v21  ;;  %v264_v48 = vadd.f32 %v262_v51, %v222_v29  ;;  %v2564_v18 = vstv %s2561_s12  ;;  %s1934_s3 = sld [smem:[#allocation2 + $0x37]]  ;;  %s1960_s12 = sld [smem:[#allocation2 + $0x4c]] }
  0x70   :  { %v360_v44 = vmul.f32 %v2563_v39, %v1418_v13  ;;  %v409_v58 = vmul.f32 %v2564_v18, %v1441_v12  ;;  %v2565_v26 = vstv %s1433_s25  ;;  %v529_v8 = vadd.f32 %v527_v19, %v481_v10  ;;  %s2566_s25 = sld [smem:[#allocation26_spill]] }
  0x71   :  { %v460_v41 = vmul.f32 %v2565_v26, %v1680_v28  ;;  %v147_v36 = vstv %s1868_s30  ;;  %v194_v62 = vstv %s1874_s14  ;;  %v243_v37 = vstv %s1876_s4  ;;  %s2597_s14 = sld [smem:[#allocation38_spill]] }
  0x72   :  { %v690_v39 = vadd.f32 %v688_v43, %v642_v3  ;;  %v313_v61 = vadd.f32 %v311_v52, %v264_v48  ;;  %v149_v11 = vmul.f32 %v147_v36, %v1140_v14  ;;  %v196_v51 = vmul.f32 %v194_v62, %v1148_v15  ;;  %s2598_s4 = sld [smem:[#allocation35_spill]] }
  0x73   :  { %v577_v21 = vadd.f32 %v575_v5, %v529_v8  ;;  %v245_v19 = vmul.f32 %v243_v37, %v1156_v16  ;;  %v285_v29 = vstv %s1891_s16  ;;  %v334_v10 = vstv %s1893_s0  ;;  %s2604_s16 = sld [smem:[#allocation37_spill]]  ;;  %s2610_s0 = sld [smem:[#allocation6_spill]] }
  0x74   :  { %v1949_v43 = vadd.f32 %v736_v4, %v690_v39  ;;  %v362_v52 = vadd.f32 %v360_v44, %v313_v61  ;;  %v198_v3 = vadd.f32 %v196_v51, %v149_v11  ;;  %v287_v48 = vmul.f32 %v285_v29, %v1104_v2 }
  0x75   :  { %v619_v8 = vadd.f32 %v617_v30, %v577_v21  ;;  %v713_v5 = vmul.f32 %v2458_v57, %v1346_v59  ;;  %v383_v18 = vstv %s1908_s17  ;;  %v336_v30 = vmul.f32 %v334_v10, %v1200_v33  ;;  %s1077_s17 = smov 125  }
  0x76   :  { %795 = vrot.lane.b32.xlu1 %v1949_v43, %s2499_s29  ;;  %v411_v61 = vadd.f32 %v409_v58, %v362_v52  ;;  %v2567_v4 = vstv %s2566_s25  ;;  %v247_v2 = vadd.f32 %v245_v19, %v198_v3  ;;  %v761_v39 = vmul.f32 %v2457_v7, %v1391_v42  ;;  %s1980_s25 = sld [smem:[#allocation2 + $0x53]] }
  0x77   :  { %v508_v44 = vmul.f32 %v2567_v4, %v1721_v46  ;;  %v667_v26 = vadd.f32 %v665_v60, %v619_v8  ;;  %v2461_v11 = vstv %s1923_s2  ;;  %v2568_v21 = vstv %s1458_s24  ;;  %s1997_s24 = sld [smem:[#allocation2 + $0x61]] }
  0x78   :  { %v462_v51 = vadd.f32 %v460_v41, %v411_v61  ;;  %v556_v58 = vmul.f32 %v2568_v21, %v1724_v53  ;;  %v289_v52 = vadd.f32 %v287_v48, %v247_v2  ;;  %v385_v19 = vmul.f32 %v383_v18, %v1228_v40 }
  0x79   :  { %v715_v60 = vadd.f32 %v713_v5, %v667_v26  ;;  %v2460_v3 = vstv %s1934_s3  ;;  %v598_v41 = vmul.f32 %v1206_v34, %v597_v17  ;;  %v434_v48 = vmul.f32 %v2461_v11, %v1253_v49 }
  0x7a   :  { %v510_v8 = vadd.f32 %v508_v44, %v462_v51  ;;  %v338_v61 = vadd.f32 %v336_v30, %v289_v52  ;;  %v646_v5 = vmul.f32 %v645_v22, %v1745_v27  ;;  %v2459_v2 = vstv %s1947_s10 }
  0x7b   :  { %v1991_v4 = vadd.f32 %v761_v39, %v715_v60  ;;  %v2569_v44 = vstv %s1476_s21  ;;  %v485_v51 = vmul.f32 %v2460_v3, %v1261_v50  ;;  %v2462_v39 = vstv %s1954_s7  ;;  %s2573_s21 = sld [smem:[#allocation28_spill]] }
  0x7c   :  { %v140_v26 = vmul.f32 %v2569_v44, %v1642_v24  ;;  %v558_v17 = vadd.f32 %v556_v58, %v510_v8  ;;  %v387_v30 = vadd.f32 %v385_v19, %v338_v61  ;;  %v621_v22 = vstv %s1960_s12  ;;  %s2262_s12 = sld [smem:[#allocation2 + $0x1f]] }
  0x7d   :  { %870 = vrot.lane.b32.xlu1 %v1991_v4, %s2499_s29  ;;  %v2571_v21 = vstv %s1478_s15  ;;  %v2572_v60 = vstv %s1484_s20  ;;  %v694_v19 = vmul.f32 %v693_v54, %v1753_v31  ;;  %v533_v61 = vmul.f32 %v2459_v2, %v1281_v56  ;;  %s2578_s20 = sld [smem:[#allocation30_spill]]  ;;  %s2584_s15 = sld [smem:[#allocation16_spill]] }
  0x7e   :  { %v183_v52 = vmul.f32 %v2571_v21, %v1649_v6  ;;  %v232_v44 = vmul.f32 %v2572_v60, %v1652_v23  ;;  %v600_v58 = vadd.f32 %v598_v41, %v558_v17  ;;  %v436_v8 = vadd.f32 %v434_v48, %v387_v30 }
  0x7f   :  { %v742_v7 = vmul.f32 %v741_v38, %v1764_v9  ;;  %v581_v21 = vmul.f32 %v2462_v39, %v1302_v63  ;;  %v2574_v41 = vstv %s2570_s23  ;;  %v623_v30 = vmul.f32 %v1211_v35, %v621_v22  ;;  %s2595_s23 = sld [smem:[#allocation34_spill]] }
  0x80   :  { %v185_v60 = vadd.f32 %v183_v52, %v140_v26  ;;  %v274_v17 = vmul.f32 %v2574_v41, %v1099_v1  ;;  %v648_v54 = vadd.f32 %v646_v5, %v600_v58  ;;  %v487_v48 = vadd.f32 %v485_v51, %v436_v8 }
  0x81   :  { %v2463_v57 = vstv %s1980_s25  ;;  %v717_v2 = vstv %s1983_s19  ;;  %v2576_v3 = vstv %s2573_s21  ;;  %v2577_v39 = vstv %s1699_s6  ;;  %s2587_s6 = sld [smem:[#allocation32_spill]]  ;;  %s1076_s19 = smov 126  }
  0x82   :  { %v234_v38 = vadd.f32 %v232_v44, %v185_v60  ;;  %v323_v11 = vmul.f32 %v2576_v3, %v1410_v32  ;;  %v144_v26 = vmul.f32 %v2577_v39, %v1642_v24  ;;  %v696_v52 = vadd.f32 %v694_v19, %v648_v54  ;;  %s2307_s21 = sld [smem:[#allocation2 + $0x5e]] }
  0x83   :  { %v535_v41 = vadd.f32 %v533_v61, %v487_v48  ;;  %v2579_v5 = vstv %s1713_s8  ;;  %v2580_v35 = vstv %s1715_s9  ;;  %v671_v44 = vmul.f32 %v2463_v57, %v1333_v47  ;;  %s2588_s8 = sld [smem:[#allocation17_spill]] }
  0x84   :  { %v189_v51 = vmul.f32 %v2579_v5, %v1649_v6  ;;  %v238_v58 = vmul.f32 %v2580_v35, %v1652_v23  ;;  %v765_v8 = vstv %s1997_s24  ;;  %v276_v3 = vadd.f32 %v274_v17, %v234_v38  ;;  %s2592_s9 = sld [smem:[#allocation33_spill]] }
  0x85   :  { %v2583_v60 = vstv %s2575_s1  ;;  %v2054_v19 = vadd.f32 %v742_v7, %v696_v52  ;;  %v583_v61 = vadd.f32 %v581_v21, %v535_v41  ;;  %v2585_v48 = vstv %s1735_s13  ;;  %s2593_s13 = sld [smem:[#allocation20_spill]] }
  0x86   :  { %v372_v39 = vmul.f32 %v2583_v60, %v1418_v13  ;;  %v191_v54 = vadd.f32 %v189_v51, %v144_v26  ;;  %v280_v5 = vmul.f32 %v2585_v48, %v1099_v1  ;;  %v719_v35 = vmul.f32 %v717_v2, %v1346_v59  ;;  %s2601_s1 = sld [smem:[#allocation36_spill]] }
  0x87   :  { %v325_v57 = vadd.f32 %v323_v11, %v276_v3  ;;  %v2586_v17 = vstv %s2578_s20  ;;  %819 = vrot.lane.b32.xlu0 %v2054_v19, %s2499_s29  ;;  %v625_v7 = vadd.f32 %v623_v30, %v583_v61  ;;  %v767_v21 = vmul.f32 %v765_v8, %v1391_v42 }
  0x88   :  { %v421_v38 = vmul.f32 %v2586_v17, %v1441_v12  ;;  %v240_v26 = vadd.f32 %v238_v58, %v191_v54  ;;  %v2589_v1 = vstv %s2581_s22  ;;  %v2590_v11 = vstv %s2582_s5  ;;  %s2272_s22 = sld [smem:[#allocation2 + $0x2d]]  ;;  %s2276_s5 = sld [smem:[#allocation2 + $0x34]] }
  0x89   :  { %v329_v52 = vmul.f32 %v2589_v1, %v1410_v32  ;;  %v374_v41 = vadd.f32 %v372_v39, %v325_v57  ;;  %v472_v51 = vmul.f32 %v2590_v11, %v1680_v28  ;;  %v2591_v3 = vstv %s2584_s15  ;;  %s2280_s15 = sld [smem:[#allocation2 + $0x3b]] }
  0x8a   :  { %v378_v60 = vmul.f32 %v2591_v3, %v1418_v13  ;;  %v148_v30 = vmul.f32 %v147_v36, %v1642_v24  ;;  %v673_v61 = vadd.f32 %v671_v44, %v625_v7  ;;  %v282_v48 = vadd.f32 %v280_v5, %v240_v26 }
  0x8b   :  { %v195_v58 = vmul.f32 %v194_v62, %v1649_v6  ;;  %v244_v57 = vmul.f32 %v243_v37, %v1652_v23  ;;  %v423_v39 = vadd.f32 %v421_v38, %v374_v41  ;;  %v2594_v54 = vstv %s2587_s6  ;;  %v2097_v62 = vld [vmem:[%s2597_s14] sm:$0xff]  ;;  %s2284_s6 = sld [smem:[#allocation2 + $0x42]] }
  0x8c   :  { %v520_v17 = vmul.f32 %v2594_v54, %v1721_v46  ;;  %v2596_v1 = vstv %s2588_s8  ;;  %v721_v3 = vadd.f32 %v719_v35, %v673_v61  ;;  %v331_v36 = vadd.f32 %v329_v52, %v282_v48  ;;  %s2290_s8 = sld [smem:[#allocation2 + $0x49]] }
  0x8d   :  { %v427_v11 = vmul.f32 %v2596_v1, %v1441_v12  ;;  %v197_v44 = vadd.f32 %v195_v58, %v148_v30  ;;  %v286_v37 = vmul.f32 %v2097_v62, %v285_v29  ;;  %v474_v5 = vadd.f32 %v472_v51, %v423_v39 }
  0x8e   :  { %v2599_v38 = vstv %s2592_s9  ;;  %v2600_v26 = vstv %s2593_s13  ;;  %v2108_v52 = vadd.f32 %v767_v21, %v721_v3  ;;  %v380_v41 = vadd.f32 %v378_v60, %v331_v36  ;;  %s2295_s9 = sld [smem:[#allocation2 + $0x50]]  ;;  %s2300_s13 = sld [smem:[#allocation2 + $0x57]] }
  0x8f   :  { %v568_v7 = vmul.f32 %v2599_v38, %v1724_v53  ;;  %v478_v35 = vmul.f32 %v2600_v26, %v1680_v28  ;;  %v246_v30 = vadd.f32 %v244_v57, %v197_v44  ;;  %v335_v61 = vmul.f32 %v334_v10, %v1410_v32 }
  0x90   :  { %v522_v48 = vadd.f32 %v520_v17, %v474_v5  ;;  %v2602_v29 = vstv %s2595_s23  ;;  %894 = vrot.lane.b32.xlu1 %v2108_v52, %s2499_s29  ;;  %v429_v58 = vadd.f32 %v427_v11, %v380_v41  ;;  %v2603_v21 = vstv %s1803_s27 }
  0x91   :  { %v610_v51 = vmul.f32 %v1206_v34, %v2602_v29  ;;  %v526_v39 = vmul.f32 %v2603_v21, %v1721_v46  ;;  %v288_v60 = vadd.f32 %v286_v37, %v246_v30  ;;  %v384_v57 = vmul.f32 %v383_v18, %v1418_v13 }
  0x92   :  { %v570_v10 = vadd.f32 %v568_v7, %v522_v48  ;;  %v2605_v54 = vstv %s2598_s4  ;;  %v480_v1 = vadd.f32 %v478_v35, %v429_v58  ;;  %v2606_v3 = vstv %s1816_s18  ;;  %s1072_s18 = smov 99  }
  0x93   :  { %v658_v17 = vmul.f32 %v2605_v54, %v1745_v27  ;;  %v574_v36 = vmul.f32 %v2606_v3, %v1724_v53  ;;  %v337_v44 = vadd.f32 %v335_v61, %v288_v60  ;;  %v2607_v11 = vstv %s1923_s2  ;;  %s2249_s2 = sld [smem:[#allocation2 + $0x3]] }
  0x94   :  { %v433_v5 = vmul.f32 %v2607_v11, %v1441_v12  ;;  %v612_v38 = vadd.f32 %v610_v51, %v570_v10  ;;  %v2608_v37 = vstv %s2601_s1  ;;  %v528_v26 = vadd.f32 %v526_v39, %v480_v1  ;;  %s2620_s1 = sld [smem:[#allocation39_spill]] }
  0x95   :  { %v706_v18 = vmul.f32 %v2608_v37, %v1753_v31  ;;  %v2609_v7 = vstv %s1823_s28  ;;  %v386_v30 = vadd.f32 %v384_v57, %v337_v44  ;;  %v2611_v35 = vstv %s1934_s3  ;;  %s2251_s3 = sld [smem:[#allocation2 + $0xa]] }
  0x96   :  { %v616_v41 = vmul.f32 %v1206_v34, %v2609_v7  ;;  %v484_v48 = vmul.f32 %v2611_v35, %v1680_v28  ;;  %v660_v29 = vadd.f32 %v658_v17, %v612_v38  ;;  %v2612_v61 = vstv %s2604_s16 }
  0x97   :  { %v754_v58 = vmul.f32 %v2612_v61, %v1764_v9  ;;  %v576_v21 = vadd.f32 %v574_v36, %v528_v26  ;;  %v2613_v51 = vstv %s1838_s11  ;;  %v435_v10 = vadd.f32 %v433_v5, %v386_v30  ;;  %s1073_s11 = smov 98  }
  0x98   :  { %v664_v60 = vmul.f32 %v2613_v51, %v1745_v27  ;;  %v2614_v39 = vstv %s1947_s10  ;;  %v708_v34 = vadd.f32 %v706_v18, %v660_v29  ;;  %v2615_v57 = vstv %s1851_s26  ;;  %v2165_v18 = vld [vmem:[%s2597_s14 + $0x10] sm:$0xff]  ;;  %s1074_s26 = smov 97   ;;  %s2253_s10 = sld [smem:[#allocation2 + $0x11]] }
  0x99   :  { %v532_v54 = vmul.f32 %v2614_v39, %v1721_v46  ;;  %v618_v1 = vadd.f32 %v616_v41, %v576_v21  ;;  %v712_v3 = vmul.f32 %v2615_v57, %v1753_v31  ;;  %v486_v17 = vadd.f32 %v484_v48, %v435_v10 }
  0x9a   :  { %v2616_v44 = vstv %s1954_s7  ;;  %v2157_v36 = vadd.f32 %v754_v58, %v708_v34  ;;  %v2617_v5 = vstv %s2610_s0  ;;  %v622_v7 = vmul.f32 %v2165_v18, %v621_v22  ;;  %s2257_s7 = sld [smem:[#allocation2 + $0x18]] }
  0x9b   :  { %v580_v11 = vmul.f32 %v2616_v44, %v1724_v53  ;;  %v666_v38 = vadd.f32 %v664_v60, %v618_v1  ;;  %v760_v37 = vmul.f32 %v2617_v5, %v1764_v9  ;;  %v534_v26 = vadd.f32 %v532_v54, %v486_v17 }
  0x9c   :  { %843 = vrot.lane.b32.xlu0 %v2157_v36, %s2499_s29  ;;  %v2618_v35 = vstv %s1980_s25  ;;  %v718_v58 = vmul.f32 %v717_v2, %v1753_v31  ;;  %v766_v22 = vmul.f32 %v765_v8, %v1764_v9  ;;  %s2266_s25 = sld [smem:[#allocation2 + $0x26]]  ;;  %vm927_vm3 = vcmask 261120  }
  0x9d   :  { %v714_v41 = vadd.f32 %v712_v3, %v666_v38  ;;  %v582_v30 = vadd.f32 %v580_v11, %v534_v26  ;;  %v670_v48 = vmul.f32 %v2618_v35, %v1745_v27 }
  0x9f   :  { %v2175_v29 = vadd.f32 %v760_v37, %v714_v41  ;;  %v624_v61 = vadd.f32 %v622_v7, %v582_v30 }
  0xa1   :  { %867 = vrot.lane.b32.xlu0 %v2175_v29, %s2499_s29  ;;  %v672_v21 = vadd.f32 %v670_v48, %v624_v61 }
  0xa3   :  { %v720_v51 = vadd.f32 %v718_v58, %v672_v21 }
  0xa5   :  { %v2185_v60 = vadd.f32 %v766_v22, %v720_v51 }
  0xa7   :  { %891 = vrot.lane.b32.xlu0 %v2185_v60, %s2499_s29  ;;  %v799_v54 = vpop.permute.xlu1 %798 }
  0xa8   :  { %v800_v2 = vsel %vm770_vm12, %v799_v54, %v1468_v55 }
  0xb8   :  { %v775_v10 = vpop.permute.xlu0 %774 }
  0xb9   :  { %v776_v39 = vsel %vm770_vm12, %v775_v10, %v1609_v20 }
  0xba   :  { %779 = vrot.lane.b32.xlu1 %v776_v39, %s2499_s29 }
  0xbe   :  { %803 = vrot.lane.b32.xlu1 %v800_v2, %s2499_s29 }
  0xc0   :  { %v823_v8 = vpop.permute.xlu1 %822 }
  0xc1   :  { %v824_v34 = vsel %vm770_vm12, %v823_v8, %v1671_v45 }
  0xc2   :  { %827 = vrot.lane.b32.xlu1 %v824_v34, %s2499_s29 }
  0xce   :  { %v847_v1 = vpop.permute.xlu1 %846 }
  0xcf   :  { %v848_v57 = vsel %vm770_vm12, %v847_v1, %v1790_v0 }
  0xd0   :  { %851 = vrot.lane.b32.xlu1 %v848_v57, %s2499_s29 }
  0xdf   :  { %v772_v3 = vpop.permute.xlu0 %771 }
  0xe0   :  { %v773_v17 = vsel %vm770_vm12, %v772_v3, %v1900_v25 }
  0xe1   :  { %777 = vrot.lane.b32.xlu0 %v773_v17, %s2499_s29 }
  0xe8   :  { %v796_v44 = vpop.permute.xlu1 %795 }
  0xe9   :  { %v797_v11 = vsel %vm770_vm12, %v796_v44, %v1949_v43 }
  0xea   :  { %801 = vrot.lane.b32.xlu0 %v797_v11, %s2499_s29 }
  0xef   :  { %v871_v38 = vpop.permute.xlu1 %870 }
  0xf0   :  { %v872_v5 = vsel %vm770_vm12, %v871_v38, %v1991_v4 }
  0xf1   :  { %875 = vrot.lane.b32.xlu1 %v872_v5, %s2499_s29 }
  0xf9   :  { %v820_v37 = vpop.permute.xlu0 %819 }
  0xfa   :  { %v821_v26 = vsel %vm770_vm12, %v820_v37, %v2054_v19 }
  0xfb   :  { %825 = vrot.lane.b32.xlu0 %v821_v26, %s2499_s29 }
 0x102   :  { %v895_v7 = vpop.permute.xlu1 %894 }
 0x103   :  { %v896_v41 = vsel %vm770_vm12, %v895_v7, %v2108_v52 }
 0x104   :  { %899 = vrot.lane.b32.xlu1 %v896_v41, %s2499_s29  ;;  %v267_v41 = vstv %s2257_s7 }
 0x10e   :  { %v844_v30 = vpop.permute.xlu0 %843 }
 0x10f   :  { %v845_v35 = vsel %vm770_vm12, %v844_v30, %v2157_v36 }
 0x110   :  { %849 = vrot.lane.b32.xlu0 %v845_v35, %s2499_s29  ;;  %v1054_v35 = vld [vmem:[%s2597_s14 + $0x8] sm:$0xff] }
 0x113   :  { %v868_v48 = vpop.permute.xlu0 %867 }
 0x114   :  { %v869_v61 = vsel %vm770_vm12, %v868_v48, %v2175_v29  ;;  %v269_v48 = vmul.f32 %v1054_v35, %v267_v41 }
 0x115   :  { %873 = vrot.lane.b32.xlu0 %v869_v61, %s2499_s29 }
 0x119   :  { %v892_v58 = vpop.permute.xlu0 %891 }
 0x11a   :  { %v893_v21 = vsel %vm770_vm12, %v892_v58, %v2185_v60  ;;  %v365_v58 = vstv %s2266_s25 }
 0x11b   :  { %897 = vrot.lane.b32.xlu0 %v893_v21, %s2499_s29  ;;  %s1075_s29 = smov 127   ;;  %v367_v21 = vmul.f32 %v365_v58, %v1228_v40 }
 0x12c   :  { %v780_v22 = vpop.permute.xlu1 %779 }
 0x12d   :  { %v782_v51 = vsel %vm770_vm12, %v780_v22, %v1609_v20  ;;  %v414_v22 = vstv %s2272_s22 }
 0x12e   :  { %787 = vrot.lane.b32.xlu1 %v782_v51, %s1072_s18 }
 0x130   :  { %v804_v10 = vpop.permute.xlu1 %803 }
 0x131   :  { %v806_v39 = vsel %vm770_vm12, %v804_v10, %v1468_v55  ;;  %v416_v10 = vmul.f32 %v414_v22, %v1253_v49 }
 0x132   :  { %811 = vrot.lane.b32.xlu1 %v806_v39, %s1073_s11  ;;  %v465_v39 = vstv %s2276_s5 }
 0x134   :  { %v828_v54 = vpop.permute.xlu1 %827 }
 0x135   :  { %v830_v2 = vsel %vm770_vm12, %v828_v54, %v1671_v45 }
 0x136   :  { %835 = vrot.lane.b32.xlu1 %v830_v2, %s1074_s26 }
 0x142   :  { %v852_v8 = vpop.permute.xlu1 %851 }
 0x143   :  { %v854_v34 = vsel %vm770_vm12, %v852_v8, %v1790_v0 }
 0x144   :  { %859 = vrot.lane.b32.xlu1 %v854_v34, %s1075_s29  ;;  %v513_v34 = vstv %s2280_s15 }
 0x153   :  { %v778_v20 = vpop.permute.xlu0 %777 }
 0x154   :  { %v781_v1 = vsel %vm770_vm12, %v778_v20, %v1900_v25  ;;  %v515_v20 = vmul.f32 %v513_v34, %v1281_v56  ;;  %v1055_v56 = vld [vmem:[%s2597_s14 + $0x18] sm:$0xff] }
 0x155   :  { %785 = vrot.lane.b32.xlu0 %v781_v1, %s1072_s18 }
 0x15c   :  { %v802_v55 = vpop.permute.xlu0 %801 }
 0x15d   :  { %v805_v57 = vsel %vm770_vm12, %v802_v55, %v1949_v43  ;;  %v561_v55 = vstv %s2284_s6 }
 0x15e   :  { %809 = vrot.lane.b32.xlu0 %v805_v57, %s1073_s11 }
 0x163   :  { %v876_v3 = vpop.permute.xlu1 %875 }
 0x164   :  { %v878_v45 = vsel %vm770_vm12, %v876_v3, %v1991_v4  ;;  %v603_v3 = vstv %s2290_s8 }
 0x165   :  { %883 = vrot.lane.b32.xlu1 %v878_v45, %s1076_s19 }
 0x16d   :  { %v826_v17 = vpop.permute.xlu0 %825 }
 0x16e   :  { %v829_v0 = vsel %vm770_vm12, %v826_v17, %v2054_v19 }
 0x16f   :  { %833 = vrot.lane.b32.xlu0 %v829_v0, %s1074_s26 }
 0x176   :  { %v900_v44 = vpop.permute.xlu1 %899 }
 0x177   :  { %v902_v25 = vsel %vm770_vm12, %v900_v44, %v2108_v52  ;;  %v135_v52 = vstv %s2249_s2 }
 0x178   :  { %907 = vrot.lane.b32.xlu1 %v902_v25, %s1077_s17  ;;  %v136_v2 = vmul.f32 %v135_v52, %v1642_v24  ;;  %v651_v25 = vstv %s2295_s9 }
 0x182   :  { %v850_v11 = vpop.permute.xlu0 %849 }
 0x183   :  { %v853_v43 = vsel %vm770_vm12, %v850_v11, %v2157_v36  ;;  %v176_v36 = vstv %s2251_s3 }
 0x184   :  { %857 = vrot.lane.b32.xlu0 %v853_v43, %s1075_s29  ;;  %v178_v37 = vmul.f32 %v176_v36, %v1148_v15  ;;  %v177_v8 = vmul.f32 %v176_v36, %v1649_v6  ;;  %v268_v6 = vmul.f32 %v2097_v62, %v267_v41  ;;  %v653_v43 = vmul.f32 %v651_v25, %v1333_v47 }
 0x185   :  { %v466_v47 = vmul.f32 %v465_v39, %v1680_v28 }
 0x186   :  { %v179_v1 = vadd.f32 %v177_v8, %v136_v2 }
 0x187   :  { %v874_v38 = vpop.permute.xlu0 %873 }
 0x188   :  { %v877_v4 = vsel %vm770_vm12, %v874_v38, %v2175_v29  ;;  %v137_v29 = vmul.f32 %v135_v52, %v1140_v14  ;;  %v316_v14 = vstv %s2262_s12 }
 0x189   :  { %881 = vrot.lane.b32.xlu0 %v877_v4, %s1076_s19  ;;  %v318_v61 = vmul.f32 %v316_v14, %v1200_v33  ;;  %v467_v33 = vmul.f32 %v465_v39, %v1261_v50  ;;  %v563_v50 = vmul.f32 %v561_v55, %v1302_v63  ;;  %v317_v44 = vmul.f32 %v316_v14, %v1410_v32 }
 0x18a   :  { %v180_v26 = vadd.f32 %v178_v37, %v137_v29  ;;  %v2619_v63 = vlaneseq  ;;  %v366_v4 = vmul.f32 %v365_v58, %v1418_v13  ;;  %v415_v32 = vmul.f32 %v414_v22, %v1441_v12 }
 0x18c   :  { %v28_v62 = vand.u32 127, %v2619_v63 }
 0x18d   :  { %v898_v5 = vpop.permute.xlu0 %897 }
 0x18e   :  { %v901_v19 = vsel %vm770_vm12, %v898_v5, %v2185_v60  ;;  %v225_v60 = vstv %s2253_s10  ;;  %v699_v5 = vstv %s2300_s13 }
 0x18f   :  { %905 = vrot.lane.b32.xlu0 %v901_v19, %s1077_s17  ;;  %v227_v7 = vmul.f32 %v225_v60, %v1156_v16  ;;  %v226_v49 = vmul.f32 %v225_v60, %v1652_v23  ;;  %v605_v23 = vmul.f32 %v1055_v56, %v603_v3  ;;  %v33_v19 = vand.u32 15, %v28_v62 }
 0x190   :  { %v701_v29 = vmul.f32 %v699_v5, %v1346_v59  ;;  %v747_v60 = vstv %s2307_s21 }
 0x191   :  { %v229_v30 = vadd.f32 %v227_v7, %v180_v26  ;;  %v228_v24 = vadd.f32 %v226_v49, %v179_v1  ;;  %v89_v26 = vadd.s32 4294967293, %v33_v19  ;;  %v749_v41 = vmul.f32 %v747_v60, %v1391_v42 }
 0x192   :  { %v93_v13 = vadd.s32 4294967294, %v33_v19  ;;  %v101_v12 = vadd.s32 1, %v33_v19  ;;  %v562_v42 = vmul.f32 %v561_v55, %v1724_v53  ;;  %v105_v22 = vadd.s32 2, %v33_v19 }
 0x193   :  { %v271_v15 = vadd.f32 %v269_v48, %v229_v30  ;;  %v270_v0 = vadd.f32 %v268_v6, %v228_v24  ;;  %vm90_vm13 = vcmp.ge.s32.totalorder %v89_v26, 0  ;;  %v97_v48 = vadd.s32 4294967295, %v33_v19 }
 0x194   :  { %vm94_vm14 = vcmp.ge.s32.totalorder %v93_v13, 0  ;;  %vm103_vm0 = vcmp.lt.s32.totalorder %v101_v12, 16  ;;  %vm107_vm1 = vcmp.lt.s32.totalorder %v105_v22, 16  ;;  %v109_v2 = vadd.s32 3, %v33_v19 }
 0x195   :  { %v320_v16 = vadd.f32 %v318_v61, %v271_v15  ;;  %v319_v38 = vadd.f32 %v317_v44, %v270_v0  ;;  %v514_v61 = vmul.f32 %v513_v34, %v1721_v46  ;;  %vm98_vm15 = vcmp.ge.s32.totalorder %v97_v48, 0 }
 0x196   :  { %vm111_vm2 = vcmp.lt.s32.totalorder %v109_v2, 16  ;;  %v700_v24 = vmul.f32 %v699_v5, %v1753_v31 }
 0x197   :  { %v369_v51 = vadd.f32 %v367_v21, %v320_v16  ;;  %v368_v37 = vadd.f32 %v366_v4, %v319_v38 }
 0x199   :  { %v418_v54 = vadd.f32 %v416_v10, %v369_v51  ;;  %v417_v35 = vadd.f32 %v415_v32, %v368_v37  ;;  %v604_v10 = vmul.f32 %v2165_v18, %v603_v3 }
 0x19b   :  { %v469_v40 = vadd.f32 %v467_v33, %v418_v54  ;;  %v468_v15 = vadd.f32 %v466_v47, %v417_v35 }
 0x19d   :  { %v517_v57 = vadd.f32 %v515_v20, %v469_v40  ;;  %v516_v21 = vadd.f32 %v514_v61, %v468_v15  ;;  %v652_v20 = vmul.f32 %v651_v25, %v1745_v27 }
 0x19f   :  { %v565_v45 = vadd.f32 %v563_v50, %v517_v57  ;;  %v564_v54 = vadd.f32 %v562_v42, %v516_v21 }
 0x1a0   :  { %v788_v17 = vpop.permute.xlu1 %787 }
 0x1a1   :  { %v607_v11 = vadd.f32 %v605_v23, %v565_v45  ;;  %v792_v59 = vsel %vm90_vm13, %v788_v17, 0.0  ;;  %v606_v53 = vadd.f32 %v604_v10, %v564_v54  ;;  %v748_v23 = vmul.f32 %v747_v60, %v1764_v9 }
 0x1a3   :  { %v655_v36 = vadd.f32 %v653_v43, %v607_v11  ;;  %v654_v50 = vadd.f32 %v652_v20, %v606_v53 }
 0x1a4   :  { %v812_v52 = vpop.permute.xlu1 %811 }
 0x1a5   :  { %v703_v7 = vadd.f32 %v701_v29, %v655_v36  ;;  %v816_v28 = vsel %vm94_vm14, %v812_v52, 0.0  ;;  %v702_v56 = vadd.f32 %v700_v24, %v654_v50 }
 0x1a7   :  { %v751_v14 = vadd.f32 %v749_v41, %v703_v7  ;;  %v750_v17 = vadd.f32 %v748_v23, %v702_v56 }
 0x1a8   :  { %v836_v30 = vpop.permute.xlu1 %835 }
 0x1a9   :  { %v794_v16 = vadd.f32 %v792_v59, %v751_v14  ;;  %v840_v51 = vsel %vm98_vm15, %v836_v30, 0.0 }
 0x1ab   :  { %v818_v46 = vadd.f32 %v816_v28, %v794_v16 }
 0x1ad   :  { %v842_v34 = vadd.f32 %v840_v51, %v818_v46 }
 0x1b6   :  { %v860_v58 = vpop.permute.xlu1 %859 }
 0x1b7   :  { %v864_v8 = vsel %vm103_vm0, %v860_v58, 0.0 }
 0x1b8   :  { %v866_v1 = vadd.f32 %v864_v8, %v842_v34 }
 0x1c7   :  { %v786_v39 = vpop.permute.xlu0 %785 }
 0x1c8   :  { %v791_v27 = vsel %vm90_vm13, %v786_v39, 0.0 }
 0x1c9   :  { %v793_v25 = vadd.f32 %v791_v27, %v750_v17 }
 0x1d0   :  { %v810_v49 = vpop.permute.xlu0 %809 }
 0x1d1   :  { %v815_v44 = vsel %vm94_vm14, %v810_v49, 0.0 }
 0x1d2   :  { %v817_v11 = vadd.f32 %v815_v44, %v793_v25 }
 0x1d7   :  { %v884_v33 = vpop.permute.xlu1 %883 }
 0x1d8   :  { %v888_v40 = vsel %vm107_vm1, %v884_v33, 0.0 }
 0x1d9   :  { %v890_v55 = vadd.f32 %v888_v40, %v866_v1 }
 0x1e1   :  { %v834_v45 = vpop.permute.xlu0 %833 }
 0x1e2   :  { %v839_v63 = vsel %vm98_vm15, %v834_v45, 0.0 }
 0x1e3   :  { %v841_v4 = vadd.f32 %v839_v63, %v817_v11 }
 0x1ea   :  { %v908_v57 = vpop.permute.xlu1 %907 }
 0x1eb   :  { %v912_v18 = vsel %vm111_vm2, %v908_v57, 0.0 }
 0x1ec   :  { %v914_v6 = vadd.f32 %v912_v18, %v890_v55 }
 0x1ee   :  { %v1035_v3 = vmul.f32 -1.442695, %v914_v6 }
 0x1f0   :  { %1044 = vpow2.f32 %v1035_v3 }
 0x1f6   :  { %v858_v0 = vpop.permute.xlu0 %857 }
 0x1f7   :  { %v863_v38 = vsel %vm103_vm0, %v858_v0, 0.0 }
 0x1f8   :  { %v865_v5 = vadd.f32 %v863_v38, %v841_v4 }
 0x1fa   :  { %v1045_v62 = vpop.eup %1044 }
 0x1fb   :  { %v882_v43 = vpop.permute.xlu0 %881  ;;  %v922_v31 = vadd.f32 1.0, %v1045_v62 }
 0x1fc   :  { %v887_v9 = vsel %vm107_vm1, %v882_v43, 0.0 }
 0x1fd   :  { %1046 = vrcp.f32 %v922_v31  ;;  %v889_v19 = vadd.f32 %v887_v9, %v865_v5 }
 0x201   :  { %v906_v52 = vpop.permute.xlu0 %905 }
 0x202   :  { %v911_v36 = vsel %vm111_vm2, %v906_v52, 0.0 }
 0x203   :  { %v913_v29 = vadd.f32 %v911_v36, %v889_v19 }
 0x205   :  { %v1034_v37 = vmul.f32 -1.442695, %v913_v29 }
 0x207   :  { %1048 = vpow2.f32 %v1034_v37  ;;  %v1047_v32 = vpop.eup %1046 }
 0x208   :  { %929 = vst.msk [vmem:[%s2620_s1 + $0x8] sm:$0xff] %vm927_vm3, %v1047_v32 }
 0x211   :  { %v1049_v60 = vpop.eup %1048 }
 0x212   :  { %v921_v26 = vadd.f32 1.0, %v1049_v60 }
 0x214   :  { %1050 = vrcp.f32 %v921_v26 }
 0x21e   :  { %v1051_v7 = vpop.eup %1050 }
 0x21f   :  { %928 = vst.msk [vmem:[%s2620_s1] sm:$0xff] %vm927_vm3, %v1051_v7 }
 0x220   :  { %934 = vsyncpa [#allocation3], 1 }

</bundles_post_ra>
